<compile_context>
chip_gen: v7x
topology: tpu7x:2x2x1
jax: 0.10.0
libtpu: 0.0.40
codegen_flags: <defaults>
</compile_context>

<pallas_src>
import math

import jax
import jax.numpy as jnp
from jax.experimental import pallas as pl
from jax.experimental.pallas import tpu as pltpu


def _tpu_config():
    """Best-effort (vmem_capacity_bytes, generation:int|None) for device 0."""
    gen = None
    try:
        kind = jax.devices()[0].device_kind.lower()
        for g in (7, 6, 5, 4):
            if f"v{g}" in kind:
                gen = g
                break
    except Exception:
        pass
    cap = None
    try:
        cap = int(pltpu.get_tpu_info().vmem_capacity_bytes)
    except Exception:
        cap = None
    if cap is None or cap <= 0:
        # v4/v5/v6: 128 MiB VMEM per TC; v7x: 64 MiB.  Unknown -> conservative.
        cap = (128 if (gen is not None and gen < 7) else 64) * 1024 * 1024
    return cap, gen


def _make_kernel(bsz, inv_scale, return_attn, exp_in_bf16):
    def kernel(k_ref, q_ref, v_ref, w_ref, pval_ref, *maybe_attn):
        # k_ref: (B, c_kq, hw)  q_ref: (B, c_kq, TQ)  v_ref: (B, d_model, hw)
        # w_ref: (d_model, d_model)
        # pval_ref: (B, d_model, TQ)  [attn_ref: (B, hw, TQ)]
        w_b = w_ref[...].astype(jnp.bfloat16)     # hoisted once per grid step

        def frame(b, carry):
            k = k_ref[b]                                      # (c_kq, hw)
            q = q_ref[b]                                      # (c_kq, TQ)
            v = v_ref[b]                                      # (d_model, hw)

            # Fold 1/sqrt(c_kq) into the small q tile; bf16 MXU operands with
            # f32 accumulation.
            qb = (q.astype(jnp.float32) * jnp.float32(inv_scale)).astype(jnp.bfloat16)
            kb = k.astype(jnp.bfloat16)

            # scores[i, j] = sum_c key[c, i] * query[c, j]   (== key^T @ query)
            scores = jax.lax.dot_general(
                kb, qb, dimension_numbers=(((0,), (0,)), ((), ())),
                preferred_element_type=jnp.float32)           # (hw, TQ) f32

            # Softmax over the key spatial axis (PyTorch dim=-2).
            m = jnp.max(scores, axis=0, keepdims=True)
            sm = scores - m
            if exp_in_bf16:
                # bf16 EUP exp on v6e/v7x (~2x transcendental throughput).
                e_b = jnp.exp(sm.astype(jnp.bfloat16))        # (hw, TQ) bf16
                denom = jnp.sum(e_b.astype(jnp.float32), axis=0, keepdims=True)
            else:
                e_f = jnp.exp(sm)                             # f32 (v5e: no bf16 EUP)
                denom = jnp.sum(e_f, axis=0, keepdims=True)
                e_b = e_f.astype(jnp.bfloat16)
            inv_denom = pl.reciprocal(denom, approx=True)     # (1, TQ) f32

            vb = v.astype(jnp.bfloat16)

            if return_attn:
                # Normalized bf16 attention tile, reused as both the writeback
                # value and the matmul operand (single cast).
                if exp_in_bf16:
                    p_attn_b = e_b * inv_denom.astype(jnp.bfloat16)
                else:
                    p_attn_b = (e_f * inv_denom).astype(jnp.bfloat16)
                vp = jax.lax.dot_general(
                    vb, p_attn_b, dimension_numbers=(((1,), (0,)), ((), ())),
                    preferred_element_type=jnp.float32)       # (d_model, TQ)
                maybe_attn[0][b] = p_attn_b.astype(maybe_attn[0].dtype)
            else:
                # Fast path: fold softmax normalization into the tiny
                # (d_model, TQ) result instead of the (hw, TQ) map.
                vp = jax.lax.dot_general(
                    vb, e_b, dimension_numbers=(((1,), (0,)), ((), ())),
                    preferred_element_type=jnp.float32)       # (d_model, TQ)
                vp = vp * inv_denom

            # p_val = (W @ v) @ p_attn == W @ (v @ p_attn): reassociated so the
            # 1x1-conv value embedding is not recomputed per column block.
            p_val = jnp.dot(w_b, vp.astype(jnp.bfloat16),
                            preferred_element_type=jnp.float32)
            pval_ref[b] = p_val.astype(pval_ref.dtype)
            return carry

        if bsz == 1:
            frame(0, 0)
        else:
            # fori_loop (not a Python for): bounds per-frame temp live ranges
            # while keeping the per-step overhead amortization.
            jax.lax.fori_loop(0, bsz, frame, 0, unroll=True)

    return kernel


def spatial_attn_block_forward(k, q, v, value_w, *, return_attn=True,
                               attn_dtype=jnp.bfloat16):
    """
    k: (n, t, c_kq, h, w)   q: (n, t, c_kq, h, w)   v: (n, t, d_model, h, w)
    value_w: (d_model, d_model)  -- 1x1 conv weight (squeezed), bias=False

    Returns (p_val, _key, _query, _attention) matching SpatialAttnBlock.forward.
    attn_dtype defaults to bf16 (halves the dominant attention-map writeback;
    pass jnp.float32 for exact-dtype parity, or an fp8 dtype on v7x).
    If return_attn=False, _attention is None and the (hw, hw) attention-map
    HBM writeback is skipped entirely.
    """
    n, t, d_model, h, w = v.shape
    _, _, c_kq, _, _ = k.shape
    hw = h * w
    nt = n * t

    # Keep the caller's dtypes -- no wrapper upcast.  MXU operands are cast to
    # bf16 in-kernel; softmax math stays f32; p_val comes back in v.dtype.
    k2 = k.reshape(nt, c_kq, hw)
    q2 = q.reshape(nt, c_kq, hw)
    v2 = v.reshape(nt, d_model, hw)
    w2 = value_w
    out_dtype = v.dtype
    attn_dtype = jnp.dtype(attn_dtype)

    # ---- generation-aware VMEM sizing ---------------------------------------
    vmem_cap, gen = _tpu_config()
    vmem_limit = min(100 * 1024 * 1024, (vmem_cap * 3) // 4)  # ~96MiB v5e/v6e, ~48MiB v7x
    budget = (vmem_limit * 3) // 4
    exp_in_bf16 = gen is not None and gen >= 6

    def step_bytes(bsz, tq):
        # Everything double-buffered by the BlockSpec pipeline.
        b = 2 * bsz * c_kq * hw * k2.dtype.itemsize                     # k
        b += 2 * bsz * c_kq * tq * q2.dtype.itemsize                    # q
        b += 2 * bsz * d_model * hw * v2.dtype.itemsize                 # v
        b += 2 * d_model * d_model * w2.dtype.itemsize                  # w
        b += 2 * bsz * d_model * tq * jnp.dtype(out_dtype).itemsize     # p_val out
        if return_attn:
            b += 2 * bsz * hw * tq * attn_dtype.itemsize                # attn out
        # In-kernel temps: f32 scores + exp + bf16 casts, ~one live frame
        # (fori_loop bounds the live range), plus misc/compiler headroom.
        b += 14 * hw * tq
        b += 2 * 1024 * 1024
        return b

    # ---- query-column tile: largest lane-dense divisor of hw that fits ------
    if hw % 128 == 0:
        cands = [d for d in range(hw, 127, -128) if hw % d == 0]
    else:
        cands = [hw]
    tq = cands[-1]
    for cand in cands:
        if step_bytes(1, cand) <= budget:
            tq = cand
            break
    n_col = hw // tq

    # ---- frames per grid step (amortize ~0.35us/step overhead) --------------
    divisors = [d for d in range(1, min(nt, 8) + 1) if nt % d == 0]
    fits = [d for d in divisors if step_bytes(d, tq) <= budget]
    if not fits:
        bsz = 1
    else:
        # keep >= 2 frame blocks when possible (v7x 2-TC sharding on frames)
        pref = [d for d in fits if nt // d >= 2]
        bsz = max(pref) if pref else max(fits)

    grid = (nt // bsz, n_col)

    in_specs = [
        pl.BlockSpec((bsz, c_kq, hw), lambda b, j: (b, 0, 0)),
        pl.BlockSpec((bsz, c_kq, tq), lambda b, j: (b, 0, j)),
        pl.BlockSpec((bsz, d_model, hw), lambda b, j: (b, 0, 0)),
        pl.BlockSpec((d_model, d_model), lambda b, j: (0, 0)),
    ]
    pval_spec = pl.BlockSpec((bsz, d_model, tq), lambda b, j: (b, 0, j))
    pval_shape = jax.ShapeDtypeStruct((nt, d_model, hw), out_dtype)

    if return_attn:
        out_specs = [pval_spec,
                     pl.BlockSpec((bsz, hw, tq), lambda b, j: (b, 0, j))]
        out_shape = (pval_shape,
                     jax.ShapeDtypeStruct((nt, hw, hw), attn_dtype))
    else:
        out_specs = pval_spec
        out_shape = pval_shape

    kernel = _make_kernel(bsz, 1.0 / math.sqrt(c_kq), return_attn, exp_in_bf16)

    grid_spec = pltpu.PrefetchScalarGridSpec(
        num_scalar_prefetch=0,
        grid=grid,
        in_specs=in_specs,
        out_specs=out_specs,
    )

    outs = pl.pallas_call(
        kernel,
        out_shape=out_shape,
        grid_spec=grid_spec,
        compiler_params=pltpu.CompilerParams(
            # Frame axis "parallel" (v7x 2-TC sharding); column axis "arbitrary"
            # so k/v tiles (index_map constant in j) stay resident across j.
            dimension_semantics=("parallel", "arbitrary"),
            vmem_limit_bytes=vmem_limit,
        ),
    )(k2, q2, v2, w2)

    if return_attn:
        p_val_flat, p_attn_flat = outs
        p_attn = p_attn_flat.reshape(n, t, h, w, h, w)
    else:
        p_val_flat = outs
        p_attn = None

    p_val = p_val_flat.reshape(n, t, d_model, h, w)

    # TODO(synk): UNetx3 is not defined in the provided source; key/query
    # embeddings are returned as identity pass-throughs.
    _key = k
    _query = q
    return p_val, _key, _query, p_attn


def _reference(k, q, v, value_w):
    """Pure-JAX f32 reference mirroring the PyTorch forward for validation."""
    n, t, d_model, h, w = v.shape
    _, _, c_kq, _, _ = k.shape
    hw = h * w
    v2 = v.reshape(n, t, d_model, hw)
    v_emb = jnp.einsum("oc,ntcp->ntop", value_w, v2)
    key = k.reshape(n, t, c_kq, hw).transpose(0, 1, 3, 2)   # (n,t,hw,c)
    query = q.reshape(n, t, c_kq, hw)                       # (n,t,c,hw)
    scores = jnp.matmul(key, query) / math.sqrt(c_kq)       # (n,t,hw,hw)
    p_attn = jax.nn.softmax(scores, axis=-2)
    p_val = jnp.matmul(v_emb, p_attn).reshape(n, t, d_model, h, w)
    return p_val, p_attn.reshape(n, t, h, w, h, w)


if __name__ == "__main__":
    n, t = 2, 2
    kq_channels = 3
    d_model = 8
    h = w = 16

    key0 = jax.random.PRNGKey(0)
    kk, kq_, kv, kw = jax.random.split(key0, 4)

    k_in = jax.random.normal(kk, (n, t, kq_channels, h, w), dtype=jnp.float32)
    q_in = jax.random.normal(kq_, (n, t, kq_channels, h, w), dtype=jnp.float32)
    v_in = jax.random.normal(kv, (n, t, d_model, h, w), dtype=jnp.float32)
    # Conv2d(d_model, d_model, 1, bias=False) weight (squeezed).
    value_w = jax.random.normal(kw, (d_model, d_model), dtype=jnp.float32) / math.sqrt(d_model)

    p_val, _key, _query, p_attn = spatial_attn_block_forward(k_in, q_in, v_in, value_w)
    jax.block_until_ready((p_val, _key, _query, p_attn))

    ref_val, ref_attn = _reference(k_in, q_in, v_in, value_w)

    assert p_val.shape == (n, t, d_model, h, w)
    assert p_attn.shape == (n, t, h, w, h, w)
    # bf16 MXU operands / bf16 attn output + approx reciprocal -> loose tolerances.
    assert jnp.allclose(p_val, ref_val, atol=5e-2, rtol=5e-2)
    assert jnp.allclose(p_attn.astype(jnp.float32), ref_attn, atol=5e-2, rtol=5e-2)
    # softmax sanity: attention sums to 1 over the key spatial axes.
    attn_sums = p_attn.astype(jnp.float32).sum(axis=(2, 3))
    assert jnp.allclose(attn_sums, 1.0, atol=1e-2)

    # Fast path: skip the dominant (hw, hw) attention writeback.
    p_val2, _, _, attn_none = spatial_attn_block_forward(
        k_in, q_in, v_in, value_w, return_attn=False)
    jax.block_until_ready(p_val2)
    assert attn_none is None
    assert jnp.allclose(p_val2, ref_val, atol=5e-2, rtol=5e-2)

    print("KERNEL_OK")
</pallas_src>

<mosaic_0001>
module attributes {stable_mosaic.version = 11 : i64} {
  func.func @kernel(%arg0: i32, %arg1: i32, %arg2: memref<2x3x256xf32, #tpu.memory_space<vmem>>, %arg3: memref<2x3x256xf32, #tpu.memory_space<vmem>>, %arg4: memref<2x8x256xf32, #tpu.memory_space<vmem>>, %arg5: memref<8x8xf32, #tpu.memory_space<vmem>>, %arg6: memref<2x8x256xf32, #tpu.memory_space<vmem>>, %arg7: memref<2x256x256xbf16, #tpu.memory_space<vmem>>) attributes {dimension_semantics = [#tpu.dimension_semantics<parallel>, #tpu.dimension_semantics<arbitrary>], iteration_bounds = array<i64: 2, 1>, scalar_prefetch = 0 : i64, scratch_operands = 0 : i64, tpu.core_type = #tpu.core_type<tc>, window_params = [{transform_indices = @transform_0, window_bounds = array<i64: 2, 3, 256>}, {transform_indices = @transform_1, window_bounds = array<i64: 2, 3, 256>}, {transform_indices = @transform_2, window_bounds = array<i64: 2, 8, 256>}, {pipeline_mode = #tpu.pipeline_mode<synchronous>, transform_indices = @transform_3, window_bounds = array<i64: 8, 8>}, {transform_indices = @transform_4, window_bounds = array<i64: 2, 8, 256>}, {transform_indices = @transform_5, window_bounds = array<i64: 2, 256, 256>}]} {
    %c0 = arith.constant 0 : index
    %c0_0 = arith.constant 0 : index
    %0 = vector.load %arg5[%c0, %c0_0] : memref<8x8xf32, #tpu.memory_space<vmem>>, vector<8x8xf32>
    %1 = arith.truncf %0 : vector<8x8xf32> to vector<8x8xbf16>
    %c0_i32 = arith.constant 0 : i32
    %2 = arith.index_cast %c0_i32 : i32 to index
    %c0_1 = arith.constant 0 : index
    %c0_2 = arith.constant 0 : index
    %3 = vector.load %arg2[%2, %c0_1, %c0_2] : memref<2x3x256xf32, #tpu.memory_space<vmem>>, vector<1x3x256xf32>
    %4 = vector.shape_cast %3 : vector<1x3x256xf32> to vector<3x256xf32>
    %5 = arith.index_cast %c0_i32 : i32 to index
    %c0_3 = arith.constant 0 : index
    %c0_4 = arith.constant 0 : index
    %6 = vector.load %arg3[%5, %c0_3, %c0_4] : memref<2x3x256xf32, #tpu.memory_space<vmem>>, vector<1x3x256xf32>
    %7 = vector.shape_cast %6 : vector<1x3x256xf32> to vector<3x256xf32>
    %8 = arith.index_cast %c0_i32 : i32 to index
    %c0_5 = arith.constant 0 : index
    %c0_6 = arith.constant 0 : index
    %9 = vector.load %arg4[%8, %c0_5, %c0_6] : memref<2x8x256xf32, #tpu.memory_space<vmem>>, vector<1x8x256xf32>
    %10 = vector.shape_cast %9 : vector<1x8x256xf32> to vector<8x256xf32>
    %cst = arith.constant 0.577350259 : f32
    %11 = vector.broadcast %cst : f32 to vector<3x256xf32>
    %12 = arith.mulf %7, %11 : vector<3x256xf32>
    %13 = arith.truncf %12 : vector<3x256xf32> to vector<3x256xbf16>
    %14 = arith.truncf %4 : vector<3x256xf32> to vector<3x256xbf16>
    %cst_7 = arith.constant dense<0.000000e+00> : vector<256x256xf32>
    %15 = tpu.matmul %14, %13, %cst_7 {dimension_numbers = #tpu.dot_dimension_numbers<[0], [0], [1], [1], [0, 1, 1, 1], [], []>} : vector<3x256xbf16>, vector<3x256xbf16>, vector<256x256xf32> -> vector<256x256xf32>
    %cst_8 = arith.constant dense<0xFF800000> : vector<256xf32>
    %16 = vector.multi_reduction <maximumf>, %15, %cst_8 [0] : vector<256x256xf32> to vector<256xf32>
    %17 = vector.shape_cast %16 : vector<256xf32> to vector<1x256xf32>
    %18 = vector.broadcast %17 : vector<1x256xf32> to vector<256x256xf32>
    %19 = arith.subf %15, %18 : vector<256x256xf32>
    %20 = math.exp %19 : vector<256x256xf32>
    %cst_9 = arith.constant dense<0.000000e+00> : vector<256xf32>
    %21 = vector.multi_reduction <add>, %20, %cst_9 [0] : vector<256x256xf32> to vector<256xf32>
    %22 = vector.shape_cast %21 : vector<256xf32> to vector<1x256xf32>
    %23 = tpu.reciprocal %22 {approx = true} : vector<1x256xf32> -> vector<1x256xf32>
    %24 = arith.truncf %10 : vector<8x256xf32> to vector<8x256xbf16>
    %25 = vector.broadcast %23 : vector<1x256xf32> to vector<256x256xf32>
    %26 = arith.mulf %20, %25 : vector<256x256xf32>
    %27 = arith.truncf %26 : vector<256x256xf32> to vector<256x256xbf16>
    %cst_10 = arith.constant dense<0.000000e+00> : vector<8x256xf32>
    %28 = tpu.matmul %24, %27, %cst_10 {dimension_numbers = #tpu.dot_dimension_numbers<[1], [0], [0], [1], [0, 0, 1, 1], [], []>} : vector<8x256xbf16>, vector<256x256xbf16>, vector<8x256xf32> -> vector<8x256xf32>
    %29 = arith.index_cast %c0_i32 : i32 to index
    %c0_11 = arith.constant 0 : index
    %c0_12 = arith.constant 0 : index
    %30 = vector.load %arg7[%29, %c0_11, %c0_12] : memref<2x256x256xbf16, #tpu.memory_space<vmem>>, vector<1x256x256xbf16>
    %31 = vector.shape_cast %30 : vector<1x256x256xbf16> to vector<256x256xbf16>
    %32 = vector.shape_cast %27 : vector<256x256xbf16> to vector<1x256x256xbf16>
    tpu.vector_store %arg7[%29, %c0_11, %c0_12], %32 {strides = array<i32>} : memref<2x256x256xbf16, #tpu.memory_space<vmem>>, vector<1x256x256xbf16>,
    %33 = arith.truncf %28 : vector<8x256xf32> to vector<8x256xbf16>
    %cst_13 = arith.constant dense<0.000000e+00> : vector<8x256xf32>
    %34 = tpu.matmul %1, %33, %cst_13 {dimension_numbers = #tpu.dot_dimension_numbers<[1], [0], [0], [1], [0, 0, 1, 1], [], []>} : vector<8x8xbf16>, vector<8x256xbf16>, vector<8x256xf32> -> vector<8x256xf32>
    %35 = arith.index_cast %c0_i32 : i32 to index
    %c0_14 = arith.constant 0 : index
    %c0_15 = arith.constant 0 : index
    %36 = vector.load %arg6[%35, %c0_14, %c0_15] : memref<2x8x256xf32, #tpu.memory_space<vmem>>, vector<1x8x256xf32>
    %37 = vector.shape_cast %36 : vector<1x8x256xf32> to vector<8x256xf32>
    %38 = vector.shape_cast %34 : vector<8x256xf32> to vector<1x8x256xf32>
    tpu.vector_store %arg6[%35, %c0_14, %c0_15], %38 {strides = array<i32>} : memref<2x8x256xf32, #tpu.memory_space<vmem>>, vector<1x8x256xf32>,
    %c1_i32 = arith.constant 1 : i32
    %39 = arith.index_cast %c1_i32 : i32 to index
    %c0_16 = arith.constant 0 : index
    %c0_17 = arith.constant 0 : index
    %40 = vector.load %arg2[%39, %c0_16, %c0_17] : memref<2x3x256xf32, #tpu.memory_space<vmem>>, vector<1x3x256xf32>
    %41 = vector.shape_cast %40 : vector<1x3x256xf32> to vector<3x256xf32>
    %42 = arith.index_cast %c1_i32 : i32 to index
    %c0_18 = arith.constant 0 : index
    %c0_19 = arith.constant 0 : index
    %43 = vector.load %arg3[%42, %c0_18, %c0_19] : memref<2x3x256xf32, #tpu.memory_space<vmem>>, vector<1x3x256xf32>
    %44 = vector.shape_cast %43 : vector<1x3x256xf32> to vector<3x256xf32>
    %45 = arith.index_cast %c1_i32 : i32 to index
    %c0_20 = arith.constant 0 : index
    %c0_21 = arith.constant 0 : index
    %46 = vector.load %arg4[%45, %c0_20, %c0_21] : memref<2x8x256xf32, #tpu.memory_space<vmem>>, vector<1x8x256xf32>
    %47 = vector.shape_cast %46 : vector<1x8x256xf32> to vector<8x256xf32>
    %cst_22 = arith.constant 0.577350259 : f32
    %48 = vector.broadcast %cst_22 : f32 to vector<3x256xf32>
    %49 = arith.mulf %44, %48 : vector<3x256xf32>
    %50 = arith.truncf %49 : vector<3x256xf32> to vector<3x256xbf16>
    %51 = arith.truncf %41 : vector<3x256xf32> to vector<3x256xbf16>
    %cst_23 = arith.constant dense<0.000000e+00> : vector<256x256xf32>
    %52 = tpu.matmul %51, %50, %cst_23 {dimension_numbers = #tpu.dot_dimension_numbers<[0], [0], [1], [1], [0, 1, 1, 1], [], []>} : vector<3x256xbf16>, vector<3x256xbf16>, vector<256x256xf32> -> vector<256x256xf32>
    %cst_24 = arith.constant dense<0xFF800000> : vector<256xf32>
    %53 = vector.multi_reduction <maximumf>, %52, %cst_24 [0] : vector<256x256xf32> to vector<256xf32>
    %54 = vector.shape_cast %53 : vector<256xf32> to vector<1x256xf32>
    %55 = vector.broadcast %54 : vector<1x256xf32> to vector<256x256xf32>
    %56 = arith.subf %52, %55 : vector<256x256xf32>
    %57 = math.exp %56 : vector<256x256xf32>
    %cst_25 = arith.constant dense<0.000000e+00> : vector<256xf32>
    %58 = vector.multi_reduction <add>, %57, %cst_25 [0] : vector<256x256xf32> to vector<256xf32>
    %59 = vector.shape_cast %58 : vector<256xf32> to vector<1x256xf32>
    %60 = tpu.reciprocal %59 {approx = true} : vector<1x256xf32> -> vector<1x256xf32>
    %61 = arith.truncf %47 : vector<8x256xf32> to vector<8x256xbf16>
    %62 = vector.broadcast %60 : vector<1x256xf32> to vector<256x256xf32>
    %63 = arith.mulf %57, %62 : vector<256x256xf32>
    %64 = arith.truncf %63 : vector<256x256xf32> to vector<256x256xbf16>
    %cst_26 = arith.constant dense<0.000000e+00> : vector<8x256xf32>
    %65 = tpu.matmul %61, %64, %cst_26 {dimension_numbers = #tpu.dot_dimension_numbers<[1], [0], [0], [1], [0, 0, 1, 1], [], []>} : vector<8x256xbf16>, vector<256x256xbf16>, vector<8x256xf32> -> vector<8x256xf32>
    %66 = arith.index_cast %c1_i32 : i32 to index
    %c0_27 = arith.constant 0 : index
    %c0_28 = arith.constant 0 : index
    %67 = vector.load %arg7[%66, %c0_27, %c0_28] : memref<2x256x256xbf16, #tpu.memory_space<vmem>>, vector<1x256x256xbf16>
    %68 = vector.shape_cast %67 : vector<1x256x256xbf16> to vector<256x256xbf16>
    %69 = vector.shape_cast %64 : vector<256x256xbf16> to vector<1x256x256xbf16>
    tpu.vector_store %arg7[%66, %c0_27, %c0_28], %69 {strides = array<i32>} : memref<2x256x256xbf16, #tpu.memory_space<vmem>>, vector<1x256x256xbf16>,
    %70 = arith.truncf %65 : vector<8x256xf32> to vector<8x256xbf16>
    %cst_29 = arith.constant dense<0.000000e+00> : vector<8x256xf32>
    %71 = tpu.matmul %1, %70, %cst_29 {dimension_numbers = #tpu.dot_dimension_numbers<[1], [0], [0], [1], [0, 0, 1, 1], [], []>} : vector<8x8xbf16>, vector<8x256xbf16>, vector<8x256xf32> -> vector<8x256xf32>
    %72 = arith.index_cast %c1_i32 : i32 to index
    %c0_30 = arith.constant 0 : index
    %c0_31 = arith.constant 0 : index
    %73 = vector.load %arg6[%72, %c0_30, %c0_31] : memref<2x8x256xf32, #tpu.memory_space<vmem>>, vector<1x8x256xf32>
    %74 = vector.shape_cast %73 : vector<1x8x256xf32> to vector<8x256xf32>
    %75 = vector.shape_cast %71 : vector<8x256xf32> to vector<1x8x256xf32>
    tpu.vector_store %arg6[%72, %c0_30, %c0_31], %75 {strides = array<i32>} : memref<2x8x256xf32, #tpu.memory_space<vmem>>, vector<1x8x256xf32>,
    %c2_i32 = arith.constant 2 : i32
    return
  }
  func.func @transform_0(%arg0: i32, %arg1: i32) -> (i32, i32, i32) {
    %c0_i32 = arith.constant 0 : i32
    %c0_i32_0 = arith.constant 0 : i32
    %c0_i32_1 = arith.constant 0 : i32
    return %arg0, %c0_i32, %c0_i32_0 : i32, i32, i32
  }
  func.func @transform_1(%arg0: i32, %arg1: i32) -> (i32, i32, i32) {
    %c0_i32 = arith.constant 0 : i32
    %c0_i32_0 = arith.constant 0 : i32
    return %arg0, %c0_i32, %arg1 : i32, i32, i32
  }
  func.func @transform_2(%arg0: i32, %arg1: i32) -> (i32, i32, i32) {
    %c0_i32 = arith.constant 0 : i32
    %c0_i32_0 = arith.constant 0 : i32
    %c0_i32_1 = arith.constant 0 : i32
    return %arg0, %c0_i32, %c0_i32_0 : i32, i32, i32
  }
  func.func @transform_3(%arg0: i32, %arg1: i32) -> (i32, i32) {
    %c0_i32 = arith.constant 0 : i32
    %c0_i32_0 = arith.constant 0 : i32
    %c0_i32_1 = arith.constant 0 : i32
    return %c0_i32, %c0_i32_0 : i32, i32
  }
  func.func @transform_4(%arg0: i32, %arg1: i32) -> (i32, i32, i32) {
    %c0_i32 = arith.constant 0 : i32
    %c0_i32_0 = arith.constant 0 : i32
    return %arg0, %c0_i32, %arg1 : i32, i32, i32
  }
  func.func @transform_5(%arg0: i32, %arg1: i32) -> (i32, i32, i32) {
    %c0_i32 = arith.constant 0 : i32
    %c0_i32_0 = arith.constant 0 : i32
    return %arg0, %c0_i32, %arg1 : i32, i32, i32
  }
}

</mosaic_0001>

<bundles_post_ra>
// kernel: tpu_custom_call.1
= control target key start
LH: loop header
LB: loop body
LE: loop exit
PB: predicated region body
PF: predicated region fallthrough
CT: control target
= control target key end

     0   :  { %11 = vsyncpa [#allocation3], 0  ;;  %s5680_s0 = inlined_call_operand.vmem [shape: f32[4,3,256], index: 0, kind: input, shape index: {}]   ;;  %s5681_s1 = inlined_call_operand.vmem [shape: f32[4,3,256], index: 1, kind: input, shape index: {}]   ;;  %s5682_s2 = inlined_call_operand.vmem [shape: f32[4,8,256], index: 2, kind: input, shape index: {}]   ;;  %s5683_s3 = inlined_call_operand.vmem [shape: f32[8,8], index: 3, kind: input, shape index: {}]   ;;  %s5684_s4 = inlined_call_operand.hbm [shape: f32[4,8,256], index: 4, kind: output, shape index: {0}]   ;;  %s5685_s5 = inlined_call_operand.hbm [shape: bf16[4,256,256], index: 5, kind: output, shape index: {1}]  }
   0x1   :  { %13 = vsyncpa [#allocation3 + $0x1], 0 }
   0x2   :  { %14 = vsyncpa [#allocation5], 0 }
   0x3   :  { %16 = vsyncpa [#allocation5 + $0x1], 0  ;;  %s3275_s18 = smov 0   ;;  %s3277_s19 = smov 0  }
   0x4   :  { %s3279_s20 = smov 0   ;;  %s3281_s21 = smov 0  }
   0x5   :  { %s3283_s22 = smov 0   ;;  %s3285_s23 = smov 0  }
   0x6 LB: > { %s2558_s24 = sadd.s32 4294967295, %s3235_s23   ;;  %s2559_s25 = sadd.s32 4294967294, %s3235_s23   ;;  %s3235_s23 = sphi %s3285_s23, %s22_s23   ;;  %s3231_s22 = sphi %s3283_s22, %s6122_s22   ;;  %s3227_s21 = sphi %s3281_s21, %s6121_s21   ;;  %s3223_s20 = sphi %s3279_s20, %s6120_s20   ;;  %s3219_s19 = sphi %s3277_s19, %s6119_s19   ;;  %s3215_s18 = sphi %s3275_s18, %s6118_s18  }
   0x7   : > { %s34_s26 = sadd.s32 1, %s3231_s22  ;;  %s144_s27 = sadd.s32 1, %s3223_s20 }
   0x8   : > { %p36_p0 = scmp.ge.s32.totalorder %s34_s26, 2  ;;  %p154_p1 = scmp.ne.s32.totalorder %s3223_s20, %s3219_s19 }
   0x9   : > { %p155_p2 = scmp.eq.s32.totalorder %s2558_s24, 1  ;;  %p160_p3 = scmp.ne.s32.totalorder %s3219_s19, %s3215_s18 }
   0xa   : > { %s6124_s26 = smov (%p36_p0, %s34_s26), 0  ;;  %p161_p5 = scmp.eq.s32.totalorder %s2559_s25, 1 }
   0xb   : > { %p3315_p4 = por %p155_p2, %p154_p1  ;;  %s139_s29 = ssub.s32 %s3231_s22, %s6124_s26 }
   0xc   : > { %p2562_p6 = scmp.ge.s32.totalorder %s3235_s23, 1  ;;  %p142_p7 = scmp.eq.s32.totalorder %s139_s29, 0 }
   0xd   : > { %p3322_p8 = por %p161_p5, %p160_p3  ;;  %p245_p9 = scmp.lt.s32.totalorder %s3235_s23, 3 }
   0xe   : > { %s3328_s6 = scalar_select %p142_p7, %s3223_s20, %s144_s27  }
   0xf   : > { %p246_p10 = pnand %p2562_p6, %p245_p9 }
  0x11   : > { %249 = sbr.rel (%p246_p10) target bundleno = 1920 (0x780), region = 36 }
  0x18   : > { %s2565_s7 = sshll.u32 %s3227_s21, 1  ;;  %v5686_v0 = vmov 0   ;;  %vm424_vm0 = vcmask 1040384   ;;  %vm425_vm1 = vcmask 1041408   ;;  %v3238_v3 = vmov 65535   ;;  %s4178_s25 = sand.u32 1, %s3219_s19  }
  0x19   : > { %p296_p11 = scmp.lt.s32.totalorder %s2565_s7, 3  ;;  %466 = vmatprep.mubr.bf16.mxu0 %v5686_v0  ;;  %v426_v4 = vsel %vm424_vm0, 4294967295, %v3238_v3  ;;  %vm375_vm2 = vcmask 23552   ;;  %s2564_s27 = sshll.u32 %s4178_s25, 9  ;;  %vm1306_vm3 = vcmask 1043456   ;;  %vm1302_vm4 = vcmask 64512  }
  0x1a   : > { %v3347_v8 = vsel %vm425_vm1, %v426_v4, 0  ;;  %s4246_s29 = scalar_lea.vmem [#allocation4], %s2564_s27  ;;  %s2563_s9 = sshll.u32 %s4178_s25, 5 }
  0x1b   : > { %s6126_s7 = smov (!%p296_p11, %s2565_s7), 3  ;;  %5826 = vst [vmem:[#allocation8_spill] sm:$0xff] %v3347_v8  ;;  %s4513_s10 = scalar_lea.vmem [#allocation2], %s2563_s9 }
  0x1c   : > { %s2722_s8 = sshll.u32 %s6126_s7, 3  ;;  %s2724_s15 = sshll.u32 %s6126_s7, 4 }
  0x1d   : > { %s3338_s11 = scalar_lea.vmem %s5680_s0, %s2722_s8  ;;  %s3343_s14 = scalar_lea.vmem %s5681_s1, %s2722_s8 }
  0x1e   : > { %v328_v1 = vld [vmem:[%s3338_s11] sm:$0x77]  ;;  %s3966_s24 = scalar_lea.vmem %s5682_s2, %s2724_s15  ;;  %s2420_s12 = sshll.u32 %s4246_s29, 4  ;;  %s5597_s12 = int_to_ptr.vmem [resolvable:$true] %s2420_s12 }
  0x1f   : > { %v329_v2 = vld [vmem:[%s3343_s14] sm:$0x77]  ;;  %v341_v5 = vpack.c.bf16 %v328_v1, %v328_v1  ;;  %v339_v13 = vcombine.high %v328_v1, %v328_v1  ;;  %s2385_s16 = scalar_lea.sflag [#allocation5], %s4178_s25  ;;  %s3125_s17 = scalar_lea.vmem %s5597_s12, 8192 }
  0x20   : > { %v332_v6 = vmul.f32 0.57735026, %v329_v2  ;;  %p3126_p12 = scmp.ne.s32.totalorder %s5597_s12, %s3125_s17 }
  0x21   : > { %343 = vxpose.xlu0.c.b16.start.end [1/1] (short) %v341_v5, 128  ;;  %v342_v14 = vpack.c.bf16 %v339_v13, %v339_v13 }
  0x22   : > { %v334_v7 = vcombine.high %v332_v6, %v332_v6  ;;  %v336_v9 = vpack.c.bf16 %v332_v6, %v332_v6  ;;  %p3127_p13 = pnand %p3126_p12, %p3315_p4 }
  0x24   : > { %v337_v10 = vpack.c.bf16 %v334_v7, %v334_v7  ;;  %v429_v11 = vand.u32 %v3347_v8, %v336_v9  ;;  %p3128_p0 = pneg %p3127_p13 }
  0x26   : > { %v432_v12 = vand.u32 %v3347_v8, %v337_v10 }
  0x28   : > { %434 = vmatprep.subr.bf16.mxu0 %v432_v12 }
  0x29   : > { %435 = vmatpush1.bf16.msra.mxu0 %v429_v11 }
  0x3e   : > { %359 = vxpose.xlu0.c.b16.start.end [1/1] (short) %v342_v14, 128 }
  0x87   : > { %v351_v15 = vpop.trf.xlu0 }
  0x88   : > { %2574 = vmatmul.mubr.msk.bf16.vlgmr.msra.gmra.mrb[0].mxu0 %vm375_vm2, %v351_v15 }
  0x89   : > { %476 = vmatprep.mubr.bf16.mxu0 %v5686_v0 }
  0x8b   : > { %v352_v16 = vpop.trf.xlu0 }
  0x8f   : > { %v353_v17 = vpop.trf.xlu0 }
  0x90   : > { %2575 = vmatmul.mubr.msk.bf16.gmra.mrb[4].mxu0 %vm375_vm2, %v352_v16 }
  0x91   : > { %486 = vmatprep.mubr.bf16.mxu0 %v5686_v0 }
  0x93   : > { %v354_v18 = vpop.trf.xlu0 }
  0x97   : > { %v355_v19 = vpop.trf.xlu0 }
  0x98   : > { %2576 = vmatmul.mubr.msk.bf16.gmra.mrb[8].mxu0 %vm375_vm2, %v353_v17 }
  0x99   : > { %496 = vmatprep.mubr.bf16.mxu0 %v5686_v0 }
  0x9b   : > { %v356_v20 = vpop.trf.xlu0 }
  0x9f   : > { %v357_v21 = vpop.trf.xlu0 }
  0xa0   : > { %2577 = vmatmul.mubr.msk.bf16.gmra.mrb[12].mxu0 %vm375_vm2, %v354_v18 }
  0xa1   : > { %506 = vmatprep.mubr.bf16.mxu0 %v5686_v0 }
  0xa3   : > { %v358_v22 = vpop.trf.xlu0 }
  0xa7   : > { %v367_v23 = vpop.trf.xlu0 }
  0xa8   : > { %2578 = vmatmul.mubr.msk.bf16.gmra.mrb[16].mxu0 %vm375_vm2, %v355_v19 }
  0xa9   : > { %516 = vmatprep.mubr.bf16.mxu0 %v5686_v0 }
  0xab   : > { %v368_v24 = vpop.trf.xlu0 }
  0xaf   : > { %v369_v25 = vpop.trf.xlu0 }
  0xb0   : > { %2579 = vmatmul.mubr.msk.bf16.gmra.mrb[20].mxu0 %vm375_vm2, %v356_v20 }
  0xb1   : > { %526 = vmatprep.mubr.bf16.mxu0 %v5686_v0 }
  0xb3   : > { %v370_v26 = vpop.trf.xlu0 }
  0xb7   : > { %v371_v27 = vpop.trf.xlu0 }
  0xb8   : > { %2580 = vmatmul.mubr.msk.bf16.gmra.mrb[24].mxu0 %vm375_vm2, %v357_v21 }
  0xb9   : > { %536 = vmatprep.mubr.bf16.mxu0 %v5686_v0 }
  0xbb   : > { %v372_v28 = vpop.trf.xlu0 }
  0xbf   : > { %v373_v29 = vpop.trf.xlu0 }
  0xc0   : > { %2581 = vmatmul.mubr.msk.bf16.gmra.mrb[28].mxu0 %vm375_vm2, %v358_v22 }
  0xc1   : > { %546 = vmatprep.mubr.bf16.mxu0 %v5686_v0 }
  0xc3   : > { %v374_v30 = vpop.trf.xlu0 }
  0xc8   : > { %2582 = vmatmul.mubr.msk.bf16.gmra.mrb[32].mxu0 %vm375_vm2, %v367_v23 }
  0xc9   : > { %556 = vmatprep.mubr.bf16.mxu0 %v5686_v0 }
  0xd0   : > { %2583 = vmatmul.mubr.msk.bf16.gmra.mrb[36].mxu0 %vm375_vm2, %v368_v24 }
  0xd1   : > { %566 = vmatprep.mubr.bf16.mxu0 %v5686_v0 }
  0xd8   : > { %2584 = vmatmul.mubr.msk.bf16.gmra.mrb[40].mxu0 %vm375_vm2, %v369_v25 }
  0xd9   : > { %576 = vmatprep.mubr.bf16.mxu0 %v5686_v0 }
  0xe0   : > { %2585 = vmatmul.mubr.msk.bf16.gmra.mrb[44].mxu0 %vm375_vm2, %v370_v26 }
  0xe1   : > { %586 = vmatprep.mubr.bf16.mxu0 %v5686_v0 }
  0xe8   : > { %2586 = vmatmul.mubr.msk.bf16.gmra.mrb[48].mxu0 %vm375_vm2, %v371_v27 }
  0xe9   : > { %596 = vmatprep.mubr.bf16.mxu0 %v5686_v0 }
  0xf0   : > { %2587 = vmatmul.mubr.msk.bf16.gmra.mrb[52].mxu0 %vm375_vm2, %v372_v28 }
  0xf1   : > { %606 = vmatprep.mubr.bf16.mxu0 %v5686_v0 }
  0xf8   : > { %2588 = vmatmul.mubr.msk.bf16.gmra.mrb[56].mxu0 %vm375_vm2, %v373_v29 }
  0xf9   : > { %616 = vmatprep.mubr.bf16.mxu0 %v5686_v0 }
 0x100   : > { %2589 = vmatmul.mubr.msk.bf16.gmra.mrb[60].mxu0 %vm375_vm2, %v374_v30 }
 0x15b   : > { %v3382_v31 = vpop.f32.mrb[0].mxu0 }
 0x15c   : > { %v3384_v32 = vpop.f32.mrb[1].mxu0 }
 0x15d   : > { %v3386_v33 = vpop.f32.mrb[2].mxu0 }
 0x15e   : > { %v3388_v34 = vpop.f32.mrb[3].mxu0 }
 0x163   : > { %v3390_v35 = vpop.f32.mrb[4].mxu0 }
 0x164   : > { %v627_v36 = vmax.f32 %v3382_v31, %v3390_v35  ;;  %v3394_v37 = vpop.f32.mrb[5].mxu0 }
 0x165   : > { %v664_v38 = vmax.f32 %v3384_v32, %v3394_v37  ;;  %v3398_v39 = vpop.f32.mrb[6].mxu0 }
 0x166   : > { %v628_v40 = vmax.f32 %v3386_v33, %v3398_v39  ;;  %v3402_v41 = vpop.f32.mrb[7].mxu0 }
 0x167   : > { %v665_v42 = vmax.f32 %v3388_v34, %v3402_v41 }
 0x16b   : > { %v3406_v43 = vpop.f32.mrb[8].mxu0 }
 0x16c   : > { %v629_v44 = vmax.f32 %v627_v36, %v3406_v43  ;;  %v3409_v45 = vpop.f32.mrb[9].mxu0 }
 0x16d   : > { %v666_v46 = vmax.f32 %v664_v38, %v3409_v45  ;;  %v3412_v47 = vpop.f32.mrb[10].mxu0 }
 0x16e   : > { %v630_v48 = vmax.f32 %v628_v40, %v3412_v47  ;;  %v3415_v49 = vpop.f32.mrb[11].mxu0 }
 0x16f   : > { %v667_v50 = vmax.f32 %v665_v42, %v3415_v49 }
 0x173   : > { %v3418_v51 = vpop.f32.mrb[12].mxu0 }
 0x174   : > { %v631_v52 = vmax.f32 %v629_v44, %v3418_v51  ;;  %v3421_v53 = vpop.f32.mrb[13].mxu0 }
 0x175   : > { %v668_v54 = vmax.f32 %v666_v46, %v3421_v53  ;;  %v3424_v55 = vpop.f32.mrb[14].mxu0 }
 0x176   : > { %v632_v56 = vmax.f32 %v630_v48, %v3424_v55  ;;  %v3427_v57 = vpop.f32.mrb[15].mxu0 }
 0x177   : > { %v669_v58 = vmax.f32 %v667_v50, %v3427_v57 }
 0x17b   : > { %v3430_v59 = vpop.f32.mrb[16].mxu0 }
 0x17c   : > { %v633_v60 = vmax.f32 %v631_v52, %v3430_v59  ;;  %v3433_v61 = vpop.f32.mrb[17].mxu0 }
 0x17d   : > { %v670_v62 = vmax.f32 %v668_v54, %v3433_v61  ;;  %v3436_v63 = vpop.f32.mrb[18].mxu0 }
 0x17e   : > { %v634_v1 = vmax.f32 %v632_v56, %v3436_v63  ;;  %v3439_v2 = vpop.f32.mrb[19].mxu0 }
 0x17f   : > { %v671_v3 = vmax.f32 %v669_v58, %v3439_v2 }
 0x183   : > { %v3442_v4 = vpop.f32.mrb[20].mxu0 }
 0x184   : > { %v635_v5 = vmax.f32 %v633_v60, %v3442_v4  ;;  %v3445_v6 = vpop.f32.mrb[21].mxu0 }
 0x185   : > { %v672_v7 = vmax.f32 %v670_v62, %v3445_v6  ;;  %v3448_v9 = vpop.f32.mrb[22].mxu0 }
 0x186   : > { %v636_v10 = vmax.f32 %v634_v1, %v3448_v9  ;;  %v3451_v11 = vpop.f32.mrb[23].mxu0 }
 0x187   : > { %5827 = vst [vmem:[#allocation9_spill] sm:$0xff] %v3451_v11  ;;  %v673_v12 = vmax.f32 %v671_v3, %v3451_v11 }
 0x18b   : > { %v3454_v13 = vpop.f32.mrb[24].mxu0 }
 0x18c   : > { %v637_v14 = vmax.f32 %v635_v5, %v3454_v13  ;;  %v3457_v15 = vpop.f32.mrb[25].mxu0 }
 0x18d   : > { %5828 = vst [vmem:[#allocation10_spill] sm:$0xff] %v3457_v15  ;;  %v674_v16 = vmax.f32 %v672_v7, %v3457_v15  ;;  %v3460_v17 = vpop.f32.mrb[26].mxu0 }
 0x18e   : > { %v638_v18 = vmax.f32 %v636_v10, %v3460_v17  ;;  %v3463_v19 = vpop.f32.mrb[27].mxu0 }
 0x18f   : > { %5829 = vst [vmem:[#allocation11_spill] sm:$0xff] %v3463_v19  ;;  %v675_v20 = vmax.f32 %v673_v12, %v3463_v19 }
 0x193   : > { %v3466_v21 = vpop.f32.mrb[28].mxu0 }
 0x194   : > { %v639_v22 = vmax.f32 %v637_v14, %v3466_v21  ;;  %v3469_v23 = vpop.f32.mrb[29].mxu0 }
 0x195   : > { %5830 = vst [vmem:[#allocation12_spill] sm:$0xff] %v3469_v23  ;;  %v676_v24 = vmax.f32 %v674_v16, %v3469_v23  ;;  %v3472_v25 = vpop.f32.mrb[30].mxu0 }
 0x196   : > { %v640_v26 = vmax.f32 %v638_v18, %v3472_v25  ;;  %v3475_v27 = vpop.f32.mrb[31].mxu0 }
 0x197   : > { %5831 = vst [vmem:[#allocation13_spill] sm:$0xff] %v3475_v27  ;;  %v677_v28 = vmax.f32 %v675_v20, %v3475_v27 }
 0x19b   : > { %v3478_v29 = vpop.f32.mrb[32].mxu0 }
 0x19c   : > { %v641_v30 = vmax.f32 %v639_v22, %v3478_v29  ;;  %v3481_v36 = vpop.f32.mrb[33].mxu0 }
 0x19d   : > { %5832 = vst [vmem:[#allocation14_spill] sm:$0xff] %v3481_v36  ;;  %v678_v38 = vmax.f32 %v676_v24, %v3481_v36  ;;  %v3484_v40 = vpop.f32.mrb[34].mxu0 }
 0x19e   : > { %v642_v42 = vmax.f32 %v640_v26, %v3484_v40  ;;  %v3487_v44 = vpop.f32.mrb[35].mxu0 }
 0x19f   : > { %5833 = vst [vmem:[#allocation15_spill] sm:$0xff] %v3487_v44  ;;  %v679_v46 = vmax.f32 %v677_v28, %v3487_v44 }
 0x1a3   : > { %v3490_v48 = vpop.f32.mrb[36].mxu0 }
 0x1a4   : > { %v643_v50 = vmax.f32 %v641_v30, %v3490_v48  ;;  %v3493_v52 = vpop.f32.mrb[37].mxu0 }
 0x1a5   : > { %5834 = vst [vmem:[#allocation16_spill] sm:$0xff] %v3493_v52  ;;  %v680_v54 = vmax.f32 %v678_v38, %v3493_v52  ;;  %v3496_v56 = vpop.f32.mrb[38].mxu0 }
 0x1a6   : > { %v644_v58 = vmax.f32 %v642_v42, %v3496_v56  ;;  %v3499_v60 = vpop.f32.mrb[39].mxu0 }
 0x1a7   : > { %5835 = vst [vmem:[#allocation17_spill] sm:$0xff] %v3499_v60  ;;  %v681_v62 = vmax.f32 %v679_v46, %v3499_v60 }
 0x1ab   : > { %v3502_v1 = vpop.f32.mrb[40].mxu0 }
 0x1ac   : > { %v645_v3 = vmax.f32 %v643_v50, %v3502_v1  ;;  %v3505_v5 = vpop.f32.mrb[41].mxu0 }
 0x1ad   : > { %5836 = vst [vmem:[#allocation18_spill] sm:$0xff] %v3505_v5  ;;  %v682_v7 = vmax.f32 %v680_v54, %v3505_v5  ;;  %v3508_v10 = vpop.f32.mrb[42].mxu0 }
 0x1ae   : > { %v646_v12 = vmax.f32 %v644_v58, %v3508_v10  ;;  %v3511_v14 = vpop.f32.mrb[43].mxu0 }
 0x1af   : > { %5837 = vst [vmem:[#allocation19_spill] sm:$0xff] %v3511_v14  ;;  %v683_v16 = vmax.f32 %v681_v62, %v3511_v14 }
 0x1b3   : > { %v3514_v18 = vpop.f32.mrb[44].mxu0 }
 0x1b4   : > { %v647_v20 = vmax.f32 %v645_v3, %v3514_v18  ;;  %v3517_v22 = vpop.f32.mrb[45].mxu0 }
 0x1b5   : > { %5838 = vst [vmem:[#allocation20_spill] sm:$0xff] %v3517_v22  ;;  %v684_v24 = vmax.f32 %v682_v7, %v3517_v22  ;;  %v3520_v26 = vpop.f32.mrb[46].mxu0 }
 0x1b6   : > { %v648_v28 = vmax.f32 %v646_v12, %v3520_v26  ;;  %v3523_v30 = vpop.f32.mrb[47].mxu0 }
 0x1b7   : > { %5839 = vst [vmem:[#allocation21_spill] sm:$0xff] %v3523_v30  ;;  %v685_v38 = vmax.f32 %v683_v16, %v3523_v30 }
 0x1bb   : > { %v3526_v42 = vpop.f32.mrb[48].mxu0 }
 0x1bc   : > { %v649_v46 = vmax.f32 %v647_v20, %v3526_v42  ;;  %v3529_v50 = vpop.f32.mrb[49].mxu0 }
 0x1bd   : > { %5840 = vst [vmem:[#allocation22_spill] sm:$0xff] %v3529_v50  ;;  %v686_v54 = vmax.f32 %v684_v24, %v3529_v50  ;;  %v3532_v58 = vpop.f32.mrb[50].mxu0 }
 0x1be   : > { %v650_v62 = vmax.f32 %v648_v28, %v3532_v58  ;;  %v3535_v3 = vpop.f32.mrb[51].mxu0 }
 0x1bf   : > { %5841 = vst [vmem:[#allocation23_spill] sm:$0xff] %v3535_v3  ;;  %v687_v7 = vmax.f32 %v685_v38, %v3535_v3 }
 0x1c3   : > { %v3538_v12 = vpop.f32.mrb[52].mxu0 }
 0x1c4   : > { %v651_v16 = vmax.f32 %v649_v46, %v3538_v12  ;;  %v3541_v0 = vpop.f32.mrb[53].mxu0 }
 0x1c5   : > { %5842 = vst [vmem:[#allocation24_spill] sm:$0xff] %v3541_v0  ;;  %v688_v20 = vmax.f32 %v686_v54, %v3541_v0  ;;  %v3544_v8 = vpop.f32.mrb[54].mxu0 }
 0x1c6   : > { %v652_v24 = vmax.f32 %v650_v62, %v3544_v8  ;;  %v3547_v50 = vpop.f32.mrb[55].mxu0 }
 0x1c7   : > { %5843 = vst [vmem:[#allocation25_spill] sm:$0xff] %v3547_v50  ;;  %v689_v28 = vmax.f32 %v687_v7, %v3547_v50 }
 0x1cb   : > { %v3550_v30 = vpop.f32.mrb[56].mxu0 }
 0x1cc   : > { %v653_v38 = vmax.f32 %v651_v16, %v3550_v30  ;;  %v3553_v3 = vpop.f32.mrb[57].mxu0 }
 0x1cd   : > { %5844 = vst [vmem:[#allocation26_spill] sm:$0xff] %v3553_v3  ;;  %v690_v46 = vmax.f32 %v688_v20, %v3553_v3  ;;  %v3556_v22 = vpop.f32.mrb[58].mxu0 }
 0x1ce   : > { %v654_v54 = vmax.f32 %v652_v24, %v3556_v22  ;;  %v3559_v0 = vpop.f32.mrb[59].mxu0 }
 0x1cf   : > { %5845 = vst [vmem:[#allocation27_spill] sm:$0xff] %v3559_v0  ;;  %v691_v62 = vmax.f32 %v689_v28, %v3559_v0 }
 0x1d3   : > { %v3562_v14 = vpop.f32.mrb[60].mxu0 }
 0x1d4   : > { %v655_v7 = vmax.f32 %v653_v38, %v3562_v14  ;;  %v3565_v50 = vpop.f32.mrb[61].mxu0 }
 0x1d5   : > { %5846 = vst [vmem:[#allocation28_spill] sm:$0xff] %v3565_v50  ;;  %v692_v16 = vmax.f32 %v690_v46, %v3565_v50  ;;  %v3568_v5 = vpop.f32.mrb[62].mxu0 }
 0x1d6   : > { %v656_v20 = vmax.f32 %v654_v54, %v3568_v5  ;;  %v3571_v3 = vpop.f32.mrb[63].mxu0 }
 0x1d7   : > { %5847 = vst [vmem:[#allocation29_spill] sm:$0xff] %v3571_v3  ;;  %v693_v24 = vmax.f32 %v691_v62, %v3571_v3 }
 0x1d8   : > { %v657_v60 = vmax.f32 %v655_v7, %v656_v20 }
 0x1d9   : > { %v694_v52 = vmax.f32 %v692_v16, %v693_v24 }
 0x1da   : > { %v658_v44 = vrot.slane %v657_v60, 4 }
 0x1db   : > { %v695_v28 = vrot.slane %v694_v52, 4 }
 0x1dc   : > { %v659_v0 = vmax.f32 %v657_v60, %v658_v44 }
 0x1dd   : > { %v696_v36 = vmax.f32 %v694_v52, %v695_v28 }
 0x1de   : > { %v660_v27 = vrot.slane %v659_v0, 2 }
 0x1df   : > { %v697_v38 = vrot.slane %v696_v36, 2 }
 0x1e0   : > { %v661_v23 = vmax.f32 %v659_v0, %v660_v27 }
 0x1e1   : > { %v698_v19 = vmax.f32 %v696_v36, %v697_v38 }
 0x1e2   : > { %v662_v15 = vrot.slane %v661_v23, 1 }
 0x1e3   : > { %v699_v46 = vrot.slane %v698_v19, 1 }
 0x1e4   : > { %v3574_v50 = vmax.f32 %v661_v23, %v662_v15 }
 0x1e5   : > { %v3576_v11 = vmax.f32 %v698_v19, %v699_v46 }
 0x1e6   : > { %v701_v54 = vsub.f32 %v3382_v31, %v3574_v50  ;;  %v703_v62 = vsub.f32 %v3386_v33, %v3574_v50  ;;  %v705_v44 = vsub.f32 %v3390_v35, %v3574_v50  ;;  %v707_v52 = vsub.f32 %v3398_v39, %v3574_v50 }
 0x1e7   : > { %v709_v0 = vsub.f32 %v3406_v43, %v3574_v50  ;;  %v711_v15 = vsub.f32 %v3412_v47, %v3574_v50  ;;  %v713_v19 = vsub.f32 %v3418_v51, %v3574_v50  ;;  %v715_v31 = vsub.f32 %v3424_v55, %v3574_v50  ;;  %v5870_v51 = vld [vmem:[#allocation25_spill] sm:$0xff] }
 0x1e8   : > { %v717_v33 = vsub.f32 %v3430_v59, %v3574_v50  ;;  %v719_v35 = vsub.f32 %v3436_v63, %v3574_v50  ;;  %v721_v39 = vsub.f32 %v3442_v4, %v3574_v50  ;;  %v723_v43 = vsub.f32 %v3448_v9, %v3574_v50  ;;  %v5863_v4 = vld [vmem:[#allocation20_spill] sm:$0xff]  ;;  %v5866_v59 = vld [vmem:[#allocation22_spill] sm:$0xff] }
 0x1e9   : > { %v765_v60 = vmul.f32 1.442695, %v701_v54  ;;  %v769_v24 = vmul.f32 1.442695, %v703_v62  ;;  %v773_v36 = vmul.f32 1.442695, %v705_v44  ;;  %v5875_v9 = vsub.f32 %v3466_v21, %v3574_v50 }
 0x1ea   : > { %v777_v46 = vmul.f32 1.442695, %v707_v52  ;;  %v781_v7 = vmul.f32 1.442695, %v709_v0  ;;  %v785_v27 = vmul.f32 1.442695, %v711_v15  ;;  %v5878_v21 = vsub.f32 %v3484_v40, %v3574_v50 }
 0x1eb   : > { %2861 = vpow2.f32 %v765_v60  ;;  %v789_v16 = vmul.f32 1.442695, %v713_v19  ;;  %v793_v23 = vmul.f32 1.442695, %v715_v31  ;;  %v797_v0 = vmul.f32 1.442695, %v717_v33 }
 0x1ec   : > { %2863 = vpow2.f32 %v769_v24  ;;  %v5850_v33 = vld [vmem:[#allocation9_spill] sm:$0xff]  ;;  %v5851_v19 = vld [vmem:[#allocation10_spill] sm:$0xff]  ;;  %v5852_v31 = vld [vmem:[#allocation11_spill] sm:$0xff]  ;;  %v805_v54 = vmul.f32 1.442695, %v721_v39 }
 0x1ed   : > { %2865 = vpow2.f32 %v773_v36  ;;  %v5854_v60 = vld [vmem:[#allocation12_spill] sm:$0xff]  ;;  %v5857_v15 = vld [vmem:[#allocation15_spill] sm:$0xff]  ;;  %v5861_v62 = vld [vmem:[#allocation18_spill] sm:$0xff]  ;;  %v821_v44 = vmul.f32 1.442695, %v5875_v9 }
 0x1ee   : > { %2867 = vpow2.f32 %v777_v46  ;;  %v801_v46 = vmul.f32 1.442695, %v719_v35  ;;  %v5856_v35 = vld [vmem:[#allocation14_spill] sm:$0xff]  ;;  %v5858_v52 = vld [vmem:[#allocation16_spill] sm:$0xff]  ;;  %v5862_v24 = vld [vmem:[#allocation19_spill] sm:$0xff] }
 0x1ef   : > { %2869 = vpow2.f32 %v781_v7  ;;  %v5855_v7 = vld [vmem:[#allocation13_spill] sm:$0xff]  ;;  %v5867_v39 = vld [vmem:[#allocation23_spill] sm:$0xff]  ;;  %v833_v9 = vmul.f32 1.442695, %v5878_v21 }
 0x1f0   : > { %2871 = vpow2.f32 %v785_v27 }
 0x1f1   : > { %2873 = vpow2.f32 %v789_v16 }
 0x1f2   : > { %2875 = vpow2.f32 %v793_v23  ;;  %v5860_v23 = vld [vmem:[#allocation17_spill] sm:$0xff] }
 0x1f3   : > { %2877 = vpow2.f32 %v797_v0 }
 0x1f4   : > { %2879 = vpow2.f32 %v801_v46  ;;  %v5871_v46 = vld [vmem:[#allocation26_spill] sm:$0xff] }
 0x1f5   : > { %v3654_v36 = vpop.eup %2861  ;;  %2881 = vpow2.f32 %v805_v54 }
 0x1f6   : > { %5848 = vst [vmem:[#allocation30_spill] sm:$0xff] %v3654_v36  ;;  %v3662_v27 = vpop.eup %2863 }
 0x1f7   : > { %5849 = vst [vmem:[#allocation31_spill] sm:$0xff] %v3662_v27  ;;  %v893_v20 = vadd.f32 %v3662_v27, %v3654_v36  ;;  %v3676_v16 = vpop.eup %2865  ;;  %v5874_v36 = vsub.f32 %v3460_v17, %v3574_v50  ;;  %v5877_v17 = vsub.f32 %v3478_v29, %v3574_v50  ;;  %v5880_v29 = vsub.f32 %v3388_v34, %v3576_v11 }
 0x1f8   : > { %5853 = vst [vmem:[#allocation9_spill] sm:$0xff] %v3676_v16  ;;  %v3689_v63 = vpop.eup %2867 }
 0x1f9   : > { %v894_v38 = vadd.f32 %v3676_v16, %v893_v20  ;;  %5859 = vst [vmem:[#allocation10_spill] sm:$0xff] %v3689_v63  ;;  %v809_v20 = vmul.f32 1.442695, %v723_v43  ;;  %v3705_v47 = vpop.eup %2869  ;;  %v5872_v16 = vld [vmem:[#allocation27_spill] sm:$0xff]  ;;  %v5873_v43 = vld [vmem:[#allocation28_spill] sm:$0xff] }
 0x1fa   : > { %5865 = vst [vmem:[#allocation11_spill] sm:$0xff] %v3705_v47  ;;  %v3721_v0 = vpop.eup %2871  ;;  %v817_v27 = vmul.f32 1.442695, %v5874_v36  ;;  %v829_v36 = vmul.f32 1.442695, %v5877_v17 }
 0x1fb   : > { %v895_v28 = vadd.f32 %v3689_v63, %v894_v38  ;;  %v5869_v38 = vsub.f32 %v3454_v13, %v3574_v50  ;;  %2883 = vpow2.f32 %v809_v20 }
 0x1fd   : > { %v813_v63 = vmul.f32 1.442695, %v5869_v38  ;;  %v896_v55 = vadd.f32 %v3705_v47, %v895_v28  ;;  %v3730_v38 = vpop.eup %2873 }
 0x1fe   : > { %v3736_v47 = vpop.eup %2875 }
 0x1ff   : > { %v897_v28 = vadd.f32 %v3721_v0, %v896_v55  ;;  %2885 = vpow2.f32 %v813_v63  ;;  %v3742_v3 = vpop.eup %2877  ;;  %v5876_v55 = vsub.f32 %v3472_v25, %v3574_v50 }
 0x200   : > { %2887 = vpow2.f32 %v817_v27  ;;  %v3751_v63 = vpop.eup %2879  ;;  %v5879_v27 = vsub.f32 %v3384_v32, %v3576_v11  ;;  %v5882_v32 = vsub.f32 %v3394_v37, %v3576_v11 }
 0x201   : > { %v898_v54 = vadd.f32 %v3730_v38, %v897_v28  ;;  %v825_v20 = vmul.f32 1.442695, %v5876_v55  ;;  %2889 = vpow2.f32 %v821_v44  ;;  %v3760_v55 = vpop.eup %2881  ;;  %v5881_v44 = vsub.f32 %v3490_v48, %v3574_v50 }
 0x202   : > { %v767_v25 = vmul.f32 1.442695, %v5879_v27  ;;  %v5884_v48 = vsub.f32 %v3402_v41, %v3576_v11 }
 0x203   : > { %v899_v13 = vadd.f32 %v3736_v47, %v898_v54  ;;  %2891 = vpow2.f32 %v825_v20  ;;  %v837_v17 = vmul.f32 1.442695, %v5881_v44  ;;  %v5883_v20 = vsub.f32 %v3496_v56, %v3574_v50 }
 0x204   : > { %2893 = vpow2.f32 %v829_v36  ;;  %v5886_v56 = vsub.f32 %v3409_v45, %v3576_v11 }
 0x205   : > { %v900_v28 = vadd.f32 %v3742_v3, %v899_v13  ;;  %v771_v13 = vmul.f32 1.442695, %v5880_v29  ;;  %v3769_v21 = vpop.eup %2883  ;;  %2895 = vpow2.f32 %v833_v9  ;;  %v841_v27 = vmul.f32 1.442695, %v5883_v20 }
 0x206   : > { %2897 = vpow2.f32 %v767_v25  ;;  %v5885_v9 = vsub.f32 %v3502_v1, %v3574_v50  ;;  %v783_v25 = vmul.f32 1.442695, %v5886_v56  ;;  %v5888_v1 = vsub.f32 %v3415_v49, %v3576_v11 }
 0x207   : > { %v901_v54 = vadd.f32 %v3751_v63, %v900_v28  ;;  %v775_v28 = vmul.f32 1.442695, %v5882_v32  ;;  %2899 = vpow2.f32 %v771_v13  ;;  %v5887_v13 = vsub.f32 %v3508_v10, %v3574_v50 }
 0x208   : > { %2901 = vpow2.f32 %v837_v17  ;;  %v845_v37 = vmul.f32 1.442695, %v5885_v9  ;;  %v787_v32 = vmul.f32 1.442695, %v5888_v1  ;;  %v5890_v10 = vsub.f32 %v3421_v53, %v3576_v11 }
 0x209   : > { %v902_v40 = vadd.f32 %v3760_v55, %v901_v54  ;;  %v3778_v36 = vpop.eup %2885  ;;  %v779_v54 = vmul.f32 1.442695, %v5884_v48  ;;  %2903 = vpow2.f32 %v775_v28  ;;  %v849_v41 = vmul.f32 1.442695, %v5887_v13 }
 0x20a   : > { %v3787_v44 = vpop.eup %2887  ;;  %2905 = vpow2.f32 %v841_v27  ;;  %v5889_v28 = vsub.f32 %v3514_v18, %v3574_v50  ;;  %v5891_v49 = vsub.f32 %v3520_v26, %v3574_v50  ;;  %v5893_v53 = vsub.f32 %v3526_v42, %v3574_v50 }
 0x20b   : > { %v903_v34 = vadd.f32 %v3769_v21, %v902_v40  ;;  %v3796_v40 = vpop.eup %2889  ;;  %2907 = vpow2.f32 %v779_v54 }
 0x20c   : > { %2909 = vpow2.f32 %v845_v37  ;;  %v853_v45 = vmul.f32 1.442695, %v5889_v28  ;;  %v857_v54 = vmul.f32 1.442695, %v5891_v49  ;;  %v5892_v37 = vsub.f32 %v3427_v57, %v3576_v11 }
 0x20d   : > { %v904_v29 = vadd.f32 %v3778_v36, %v903_v34  ;;  %v3805_v27 = vpop.eup %2891  ;;  %2911 = vpow2.f32 %v783_v25  ;;  %v791_v34 = vmul.f32 1.442695, %v5890_v10  ;;  %v861_v25 = vmul.f32 1.442695, %v5893_v53 }
 0x20e   : > { %v3810_v48 = vpop.eup %2893  ;;  %2913 = vpow2.f32 %v849_v41  ;;  %v5894_v41 = vsub.f32 %v3433_v61, %v3576_v11  ;;  %v5895_v57 = vsub.f32 %v3532_v58, %v3574_v50  ;;  %v5899_v53 = vsub.f32 %v3544_v8, %v3574_v50 }
 0x20f   : > { %v905_v17 = vadd.f32 %v3787_v44, %v904_v29  ;;  %v3816_v18 = vpop.eup %2895  ;;  %2915 = vpow2.f32 %v787_v32  ;;  %v795_v29 = vmul.f32 1.442695, %v5892_v37  ;;  %v5898_v37 = vsub.f32 %v3445_v6, %v3576_v11 }
 0x210   : > { %v3821_v56 = vpop.eup %2897  ;;  %2917 = vpow2.f32 %v853_v45  ;;  %v865_v32 = vmul.f32 1.442695, %v5895_v57 }
 0x211   : > { %v906_v20 = vadd.f32 %v3796_v40, %v905_v17  ;;  %v3827_v26 = vpop.eup %2899  ;;  %2919 = vpow2.f32 %v791_v34  ;;  %v799_v17 = vmul.f32 1.442695, %v5894_v41  ;;  %v5897_v34 = vsub.f32 %v3538_v12, %v3574_v50 }
 0x212   : > { %v3832_v1 = vpop.eup %2901  ;;  %2921 = vpow2.f32 %v857_v54  ;;  %v930_v42 = vadd.f32 %v3827_v26, %v3821_v56 }
 0x213   : > { %v907_v9 = vadd.f32 %v3805_v27, %v906_v20  ;;  %v3840_v45 = vpop.eup %2903  ;;  %2923 = vpow2.f32 %v795_v29  ;;  %v5896_v20 = vsub.f32 %v3439_v2, %v3576_v11  ;;  %v869_v58 = vmul.f32 1.442695, %v5897_v34 }
 0x214   : > { %v3845_v10 = vpop.eup %2905  ;;  %2925 = vpow2.f32 %v861_v25  ;;  %v931_v54 = vadd.f32 %v3840_v45, %v930_v42  ;;  %v807_v29 = vmul.f32 1.442695, %v5898_v37  ;;  %v873_v25 = vmul.f32 1.442695, %v5899_v53 }
 0x215   : > { %v908_v13 = vadd.f32 %v3810_v48, %v907_v9  ;;  %v803_v61 = vmul.f32 1.442695, %v5896_v20  ;;  %v3852_v9 = vpop.eup %2907  ;;  %2927 = vpow2.f32 %v799_v17  ;;  %v5900_v17 = vsub.f32 %v5850_v33, %v3576_v11 }
 0x216   : > { %v3857_v2 = vpop.eup %2909  ;;  %2929 = vpow2.f32 %v865_v32  ;;  %v5901_v32 = vsub.f32 %v3550_v30, %v3574_v50 }
 0x217   : > { %v909_v28 = vadd.f32 %v3816_v18, %v908_v13  ;;  %v932_v13 = vadd.f32 %v3852_v9, %v931_v54  ;;  %v3864_v41 = vpop.eup %2911  ;;  %2931 = vpow2.f32 %v803_v61  ;;  %v811_v57 = vmul.f32 1.442695, %v5900_v17 }
 0x218   : > { %v3869_v6 = vpop.eup %2913  ;;  %2933 = vpow2.f32 %v869_v58  ;;  %v5902_v61 = vsub.f32 %v5851_v19, %v3576_v11  ;;  %v5903_v58 = vsub.f32 %v3556_v22, %v3574_v50 }
 0x219   : > { %v910_v49 = vadd.f32 %v3832_v1, %v909_v28  ;;  %v877_v28 = vmul.f32 1.442695, %v5901_v32  ;;  %v933_v42 = vadd.f32 %v3864_v41, %v932_v13  ;;  %v3876_v20 = vpop.eup %2915  ;;  %2935 = vpow2.f32 %v807_v29 }
 0x21a   : > { %v815_v34 = vmul.f32 1.442695, %v5902_v61  ;;  %v3881_v33 = vpop.eup %2917  ;;  %2937 = vpow2.f32 %v873_v25  ;;  %v5904_v29 = vsub.f32 %v5852_v31, %v3576_v11  ;;  %v5905_v25 = vsub.f32 %v3562_v14, %v3574_v50 }
 0x21b   : > { %v911_v12 = vadd.f32 %v3845_v10, %v910_v49  ;;  %v881_v49 = vmul.f32 1.442695, %v5903_v58  ;;  %v934_v54 = vadd.f32 %v3876_v20, %v933_v42  ;;  %v3888_v37 = vpop.eup %2919  ;;  %2939 = vpow2.f32 %v811_v57 }
 0x21c   : > { %v819_v53 = vmul.f32 1.442695, %v5904_v29  ;;  %v3893_v19 = vpop.eup %2921  ;;  %2941 = vpow2.f32 %v877_v28  ;;  %v5906_v57 = vsub.f32 %v5854_v60, %v3576_v11  ;;  %v5907_v28 = vsub.f32 %v3568_v5, %v3574_v50 }
 0x21d   : > { %v912_v8 = vadd.f32 %v3857_v2, %v911_v12  ;;  %v885_v12 = vmul.f32 1.442695, %v5905_v25  ;;  %v935_v13 = vadd.f32 %v3888_v37, %v934_v54  ;;  %v3900_v17 = vpop.eup %2923  ;;  %2943 = vpow2.f32 %v815_v34 }
 0x21e   : > { %v823_v32 = vmul.f32 1.442695, %v5906_v57  ;;  %v3905_v31 = vpop.eup %2925  ;;  %2945 = vpow2.f32 %v881_v49  ;;  %v5908_v34 = vsub.f32 %v5855_v7, %v3576_v11  ;;  %v5909_v50 = vsub.f32 %v5856_v35, %v3576_v11 }
 0x21f   : > { %v913_v30 = vadd.f32 %v3869_v6, %v912_v8  ;;  %v889_v8 = vmul.f32 1.442695, %v5907_v28  ;;  %v936_v42 = vadd.f32 %v3900_v17, %v935_v13  ;;  %v3912_v61 = vpop.eup %2927  ;;  %2947 = vpow2.f32 %v819_v53 }
 0x220   : > { %v827_v58 = vmul.f32 1.442695, %v5908_v34  ;;  %v3917_v60 = vpop.eup %2929  ;;  %2949 = vpow2.f32 %v885_v12  ;;  %v831_v54 = vmul.f32 1.442695, %v5909_v50  ;;  %v5910_v12 = vsub.f32 %v5857_v15, %v3576_v11 }
 0x221   : > { %v914_v22 = vadd.f32 %v3881_v33, %v913_v30  ;;  %v937_v30 = vadd.f32 %v3912_v61, %v936_v42  ;;  %v3921_v5 = vpop.eup %2931  ;;  %2951 = vpow2.f32 %v823_v32  ;;  %v5912_v28 = vsub.f32 %v5858_v52, %v3576_v11 }
 0x222   : > { %v3926_v29 = vpop.eup %2933  ;;  %2953 = vpow2.f32 %v889_v8 }
 0x223   : > { %v915_v14 = vadd.f32 %v3893_v19, %v914_v22  ;;  %v938_v53 = vadd.f32 %v3921_v5, %v937_v30  ;;  %v3930_v25 = vpop.eup %2935  ;;  %2955 = vpow2.f32 %v827_v58  ;;  %v835_v22 = vmul.f32 1.442695, %v5910_v12 }
 0x224   : > { %v3935_v13 = vpop.eup %2937  ;;  %2957 = vpow2.f32 %v831_v54  ;;  %v839_v8 = vmul.f32 1.442695, %v5912_v28  ;;  %v5914_v58 = vsub.f32 %v5860_v23, %v3576_v11 }
 0x225   : > { %v916_v49 = vadd.f32 %v3905_v31, %v915_v14  ;;  %v939_v57 = vadd.f32 %v3930_v25, %v938_v53  ;;  %v3939_v32 = vpop.eup %2939  ;;  %2959 = vpow2.f32 %v835_v22 }
 0x226   : > { %5911 = vst [vmem:[#allocation12_spill] sm:$0xff] %v3939_v32  ;;  %v3944_v14 = vpop.eup %2941  ;;  %2961 = vpow2.f32 %v839_v8 }
 0x227   : > { %v917_v7 = vadd.f32 %v3917_v60, %v916_v49  ;;  %v940_v15 = vadd.f32 %v3939_v32, %v939_v57  ;;  %v3948_v34 = vpop.eup %2943  ;;  %v843_v49 = vmul.f32 1.442695, %v5914_v58 }
 0x228   : > { %5913 = vst [vmem:[#allocation13_spill] sm:$0xff] %v3948_v34  ;;  %v3953_v30 = vpop.eup %2945 }
 0x229   : > { %v918_v35 = vadd.f32 %v3926_v29, %v917_v7  ;;  %v941_v52 = vadd.f32 %v3948_v34, %v940_v15  ;;  %v3958_v54 = vpop.eup %2947  ;;  %v5916_v7 = vsub.f32 %v5861_v62, %v3576_v11  ;;  %2963 = vpow2.f32 %v843_v49 }
 0x22a   : > { %5915 = vst [vmem:[#allocation14_spill] sm:$0xff] %v3958_v54  ;;  %v3968_v23 = vpop.eup %2949  ;;  %v5918_v62 = vsub.f32 %v5862_v24, %v3576_v11 }
 0x22b   : > { %v919_v42 = vadd.f32 %v3935_v13, %v918_v35  ;;  %v847_v53 = vmul.f32 1.442695, %v5916_v7  ;;  %v942_v22 = vadd.f32 %v3958_v54, %v941_v52  ;;  %v331_v35 = vld [vmem:[%s3966_s24 + $0x8] sm:$0xff]  ;;  %v3973_v57 = vpop.eup %2951  ;;  %v5919_v52 = vsub.f32 %v5863_v4, %v3576_v11 }
 0x22c   : > { %5917 = vst [vmem:[#allocation15_spill] sm:$0xff] %v3973_v57  ;;  %v851_v28 = vmul.f32 1.442695, %v5918_v62  ;;  %v970_v8 = vpack.c.bf16 %v331_v35, %v331_v35  ;;  %v3979_v15 = vpop.eup %2953  ;;  %v5922_v4 = vsub.f32 %v5866_v59, %v3576_v11 }
 0x22d   : > { %v920_v50 = vadd.f32 %v3944_v14, %v919_v42  ;;  %v2624_v42 = vld [vmem:[%s3338_s11 + $0x8] sm:$0x77]  ;;  %v943_v7 = vadd.f32 %v3973_v57, %v942_v22  ;;  %2965 = vpow2.f32 %v847_v53  ;;  %v855_v49 = vmul.f32 1.442695, %v5919_v52  ;;  %s2792_s11 = sshll.u32 %s3227_s21, 13 }
 0x22e   : > { %v1372_v34 = vpack.c.bf16 %v2624_v42, %v2624_v42  ;;  %1099 = vmatprep.mubr.bf16.mxu1 %v970_v8  ;;  %2967 = vpow2.f32 %v851_v28  ;;  %v863_v8 = vmul.f32 1.442695, %v5922_v4  ;;  %v5924_v28 = vsub.f32 %v5867_v39, %v3576_v11  ;;  %s5595_s15 = scalar_lea.hbm %s5685_s5, %s2792_s11 }
 0x22f   : > { %v921_v12 = vadd.f32 %v3953_v30, %v920_v50  ;;  %v3983_v50 = vpop.eup %2955  ;;  %2969 = vpow2.f32 %v855_v49  ;;  %v5925_v49 = vld [vmem:[#allocation24_spill] sm:$0xff]  ;;  %v5927_v39 = vsub.f32 %v5870_v51, %v3576_v11 }
 0x230   : > { %v944_v35 = vadd.f32 %v3983_v50, %v943_v7  ;;  %1374 = vxpose.xlu1.c.b16.start.end [1/1] (short) %v1372_v34, 128  ;;  %v3990_v62 = vpop.eup %2957  ;;  %v867_v52 = vmul.f32 1.442695, %v5924_v28  ;;  %v5926_v59 = vsub.f32 %v5925_v49, %v3576_v11 }
 0x231   : > { %v922_v58 = vadd.f32 %v3968_v23, %v921_v12  ;;  %v5920_v12 = vld [vmem:[#allocation21_spill] sm:$0xff]  ;;  %v3996_v32 = vpop.eup %2959 }
 0x232   : > { %v5921_v22 = vsub.f32 %v5920_v12, %v3576_v11  ;;  %v945_v53 = vadd.f32 %v3990_v62, %v944_v35  ;;  %v4002_v7 = vpop.eup %2961  ;;  %v871_v4 = vmul.f32 1.442695, %v5926_v59 }
 0x233   : > { %v923_v24 = vadd.f32 %v3979_v15, %v922_v58  ;;  %5923 = vst [vmem:[#allocation16_spill] sm:$0xff] %v4002_v7 }
 0x234   : > { %v859_v57 = vmul.f32 1.442695, %v5921_v22  ;;  %v946_v34 = vadd.f32 %v3996_v32, %v945_v53  ;;  %v4008_v22 = vpop.eup %2963 }
 0x235   : > { %v924_v54 = vrot.slane %v923_v24, 4 }
 0x236   : > { %2971 = vpow2.f32 %v859_v57  ;;  %v947_v35 = vadd.f32 %v4002_v7, %v946_v34  ;;  %v875_v57 = vmul.f32 1.442695, %v5927_v39 }
 0x237   : > { %v925_v58 = vadd.f32 %v924_v54, %v923_v24  ;;  %2973 = vpow2.f32 %v863_v8  ;;  %v4014_v53 = vpop.eup %2965  ;;  %v5928_v8 = vsub.f32 %v5871_v46, %v3576_v11 }
 0x238   : > { %v948_v24 = vadd.f32 %v4008_v22, %v947_v35  ;;  %2975 = vpow2.f32 %v867_v52  ;;  %v4020_v7 = vpop.eup %2967 }
 0x239   : > { %v926_v12 = vrot.slane %v925_v58, 2  ;;  %2977 = vpow2.f32 %v871_v4  ;;  %v879_v49 = vmul.f32 1.442695, %v5928_v8  ;;  %v4029_v35 = vpop.eup %2969  ;;  %v5930_v4 = vsub.f32 %v5873_v43, %v3576_v11 }
 0x23a   : > { %v949_v34 = vadd.f32 %v4014_v53, %v948_v24  ;;  %2979 = vpow2.f32 %v875_v57  ;;  %v1370_v43 = vcombine.high %v2624_v42, %v2624_v42 }
 0x23b   : > { %v927_v54 = vadd.f32 %v926_v12, %v925_v58  ;;  %v5929_v58 = vsub.f32 %v5872_v16, %v3576_v11  ;;  %2981 = vpow2.f32 %v879_v49  ;;  %v887_v46 = vmul.f32 1.442695, %v5930_v4 }
 0x23c   : > { %v950_v52 = vadd.f32 %v4020_v7, %v949_v34  ;;  %v5931_v34 = vld [vmem:[#allocation29_spill] sm:$0xff] }
 0x23d   : > { %v928_v28 = vrot.slane %v927_v54, 1  ;;  %v883_v12 = vmul.f32 1.442695, %v5929_v58  ;;  %v5932_v8 = vsub.f32 %v5931_v34, %v3576_v11  ;;  %v1373_v11 = vpack.c.bf16 %v1370_v43, %v1370_v43 }
 0x23e   : > { %v951_v59 = vadd.f32 %v4029_v35, %v950_v52 }
 0x23f   : > { %v929_v51 = vadd.f32 %v928_v28, %v927_v54  ;;  %2983 = vpow2.f32 %v883_v12  ;;  %v891_v54 = vmul.f32 1.442695, %v5932_v8 }
 0x240   : > { %v4032_v24 = vpop.eup %2971 }
 0x241   : > { %v952_v39 = vadd.f32 %v4032_v24, %v951_v59  ;;  %v4038_v16 = vpop.eup %2973  ;;  %2985 = vrcp.f32 %v929_v51 }
 0x242   : > { %v4044_v28 = vpop.eup %2975  ;;  %2987 = vpow2.f32 %v887_v46 }
 0x243   : > { %v953_v57 = vadd.f32 %v4038_v16, %v952_v39  ;;  %v4047_v58 = vpop.eup %2977  ;;  %2989 = vpow2.f32 %v891_v54 }
 0x244   : > { %v4050_v52 = vpop.eup %2979 }
 0x245   : > { %v954_v49 = vadd.f32 %v4044_v28, %v953_v57  ;;  %v4053_v59 = vpop.eup %2981 }
 0x247   : > { %v955_v12 = vadd.f32 %v4047_v58, %v954_v49 }
 0x249   : > { %v956_v51 = vadd.f32 %v4050_v52, %v955_v12  ;;  %v4055_v4 = vpop.eup %2983 }
 0x24b   : > { %v957_v39 = vadd.f32 %v4053_v59, %v956_v51  ;;  %v4058_v46 = vpop.eup %2985 }
 0x24c   : > { %v4061_v8 = vpop.eup %2987  ;;  %v4066_v54 = vmul.f32 %v4058_v46, %v3796_v40  ;;  %v4070_v57 = vmul.f32 %v4058_v46, %v3805_v27  ;;  %v4076_v43 = vmul.f32 %v4058_v46, %v3810_v48  ;;  %v4080_v12 = vmul.f32 %v4058_v46, %v3816_v18 }
 0x24d   : > { %v958_v34 = vadd.f32 %v4055_v4, %v957_v39  ;;  %1390 = vxpose.xlu1.c.b16.start.end [1/1] (short) %v1373_v11, 128  ;;  %v4072_v49 = vpop.eup %2989  ;;  %v4087_v11 = vmul.f32 %v4058_v46, %v3832_v1  ;;  %v4091_v27 = vmul.f32 %v4058_v46, %v3845_v10  ;;  %v4097_v18 = vmul.f32 %v4058_v46, %v3857_v2 }
 0x24e   : > { %5933 = vst [vmem:[#allocation17_spill] sm:$0xff] %v4072_v49  ;;  %v4101_v39 = vmul.f32 %v4058_v46, %v3869_v6  ;;  %v4115_v2 = vmul.f32 %v4058_v46, %v3905_v31  ;;  %v4121_v48 = vmul.f32 %v4058_v46, %v3917_v60  ;;  %v4129_v10 = vmul.f32 %v4058_v46, %v3935_v13  ;;  %v5941_v6 = vld [vmem:[#allocation30_spill] sm:$0xff] }
 0x24f   : > { %v959_v42 = vadd.f32 %v4061_v8, %v958_v34  ;;  %v4105_v34 = vmul.f32 %v4058_v46, %v3881_v33  ;;  %v4125_v33 = vmul.f32 %v4058_v46, %v3926_v29  ;;  %v4135_v40 = vmul.f32 %v4058_v46, %v3944_v14 }
 0x250   : > { %5934 = vst [vmem:[#allocation18_spill] sm:$0xff] %v4115_v2  ;;  %5935 = vst [vmem:[#allocation19_spill] sm:$0xff] %v4121_v48  ;;  %v4139_v60 = vmul.f32 %v4058_v46, %v3953_v30  ;;  %v4147_v13 = vmul.f32 %v4058_v46, %v3968_v23  ;;  %v5942_v23 = vld [vmem:[#allocation31_spill] sm:$0xff]  ;;  %v5943_v2 = vld [vmem:[#allocation9_spill] sm:$0xff] }
 0x251   : > { %v960_v51 = vadd.f32 %v4072_v49, %v959_v42  ;;  %v4111_v42 = vmul.f32 %v4058_v46, %v3893_v19  ;;  %5936 = vst [vmem:[#allocation20_spill] sm:$0xff] %v4125_v33  ;;  %5937 = vst [vmem:[#allocation22_spill] sm:$0xff] %v4129_v10  ;;  %v971_v10 = vmul.f32 %v4058_v46, %v5941_v6  ;;  %v5944_v49 = vld [vmem:[#allocation10_spill] sm:$0xff] }
 0x252   : > { %5938 = vst [vmem:[#allocation23_spill] sm:$0xff] %v4139_v60  ;;  %5939 = vst [vmem:[#allocation25_spill] sm:$0xff] %v4147_v13  ;;  %v973_v33 = vmul.f32 %v4058_v46, %v5942_v23  ;;  %v4167_v30 = vmul.f32 %v4058_v46, %v5944_v49  ;;  %v5945_v60 = vld [vmem:[#allocation11_spill] sm:$0xff]  ;;  %v4182_v6 = vmul.f32 %v4058_v46, %v3730_v38 }
 0x253   : > { %v961_v1 = vrot.slane %v960_v51, 4  ;;  %v4199_v38 = vmul.f32 %v4058_v46, %v3751_v63  ;;  %v4211_v23 = vmul.f32 %v4058_v46, %v3769_v21 }
 0x254   : > { %v1035_v49 = vpack.c.bf16 %v973_v33, %v971_v10 }
 0x255   : > { %v962_v19 = vadd.f32 %v961_v1, %v960_v51  ;;  %v4151_v51 = vmul.f32 %v4058_v46, %v3979_v15  ;;  %v4163_v15 = vmul.f32 %v4058_v46, %v5943_v2  ;;  %v4186_v2 = vmul.f32 %v4058_v46, %v3736_v47 }
 0x257   : > { %5940 = vst [vmem:[#allocation26_spill] sm:$0xff] %v4151_v51  ;;  %v963_v14 = vrot.slane %v962_v19, 2 }
 0x259   : > { %v964_v29 = vadd.f32 %v963_v14, %v962_v19  ;;  %v4171_v19 = vmul.f32 %v4058_v46, %v5945_v60  ;;  %v4195_v60 = vmul.f32 %v4058_v46, %v3742_v3  ;;  %v4207_v14 = vmul.f32 %v4058_v46, %v3760_v55 }
 0x25a   : > { %v4215_v3 = vmul.f32 %v4058_v46, %v3778_v36 }
 0x25b   : > { %v965_v31 = vrot.slane %v964_v29, 1 }
 0x25d   : > { %v966_v48 = vadd.f32 %v965_v31, %v964_v29  ;;  %v1037_v31 = vpack.c.bf16 %v4167_v30, %v4163_v15 }
 0x25f   : > { %2991 = vrcp.f32 %v966_v48  ;;  %v4175_v48 = vmul.f32 %v4058_v46, %v3721_v0 }
 0x269   : > { %v4201_v29 = vpop.eup %2991 }
 0x26a   : > { %v972_v63 = vmul.f32 %v4201_v29, %v3821_v56  ;;  %v974_v1 = vmul.f32 %v4201_v29, %v3827_v26  ;;  %v976_v47 = vmul.f32 %v4201_v29, %v3840_v45  ;;  %v978_v55 = vmul.f32 %v4201_v29, %v3852_v9 }
 0x26b   : > { %v980_v21 = vmul.f32 %v4201_v29, %v3864_v41  ;;  %v982_v0 = vmul.f32 %v4201_v29, %v3876_v20  ;;  %v4231_v36 = vmul.f32 %v4201_v29, %v3888_v37  ;;  %v4235_v56 = vmul.f32 %v4201_v29, %v3900_v17 }
 0x26c   : > { %v1036_v26 = vpack.c.bf16 %v974_v1, %v972_v63  ;;  %v2725_v51 = vpack.c.bf16 %v972_v63, %v971_v10  ;;  %v2726_v45 = vpack.c.bf16 %v974_v1, %v973_v33  ;;  %v4239_v9 = vmul.f32 %v4058_v46, %v3787_v44  ;;  %v5946_v1 = vld [vmem:[#allocation12_spill] sm:$0xff] }
 0x26d   : > { %v2727_v41 = vpack.c.bf16 %v976_v47, %v4163_v15  ;;  %v2728_v13 = vpack.c.bf16 %v978_v55, %v4167_v30  ;;  %v2729_v20 = vpack.c.bf16 %v980_v21, %v4171_v19  ;;  %v1043_v37 = vpack.c.bf16 %v4199_v38, %v4195_v60 }
 0x26e   : > { %1067 = vmatprep.subr.bf16.mxu1 %v1036_v26  ;;  %1268 = vst [vmem:[%s4246_s29] sm:$0xff] %v2725_v51  ;;  %1269 = vst [vmem:[%s4246_s29 + $0x8] sm:$0xff] %v2726_v45  ;;  %v1038_v44 = vpack.c.bf16 %v978_v55, %v976_v47  ;;  %v2730_v17 = vpack.c.bf16 %v982_v0, %v4175_v48  ;;  %v2731_v46 = vpack.c.bf16 %v4231_v36, %v4182_v6 }
 0x26f   : > { %v2732_v10 = vpack.c.bf16 %v4235_v56, %v4186_v2  ;;  %1068 = vmatpush1.bf16.msra.mxu1 %v1035_v49  ;;  %1270 = vst [vmem:[%s4246_s29 + $0x10] sm:$0xff] %v2727_v41  ;;  %1271 = vst [vmem:[%s4246_s29 + $0x18] sm:$0xff] %v2728_v13  ;;  %v4260_v33 = vmul.f32 %v4201_v29, %v3912_v61  ;;  %v4264_v51 = vmul.f32 %v4201_v29, %v3921_v5  ;;  %v5947_v61 = vld [vmem:[#allocation13_spill] sm:$0xff]  ;;  %v5948_v5 = vld [vmem:[#allocation14_spill] sm:$0xff] }
 0x270   : > { %1272 = vst [vmem:[%s4246_s29 + $0x20] sm:$0xff] %v2729_v20  ;;  %v4268_v30 = vmul.f32 %v4201_v29, %v3930_v25  ;;  %v4272_v15 = vmul.f32 %v4201_v29, %v5946_v1  ;;  %1069 = vmatprep.subr.bf16.mxu1 %v1038_v44  ;;  %1273 = vst [vmem:[%s4246_s29 + $0x28] sm:$0xff] %v2730_v17  ;;  %v4279_v13 = vmul.f32 %v4201_v29, %v5947_v61  ;;  %v5949_v25 = vld [vmem:[#allocation15_spill] sm:$0xff] }
 0x271   : > { %1274 = vst [vmem:[%s4246_s29 + $0x30] sm:$0xff] %v2731_v46  ;;  %1275 = vst [vmem:[%s4246_s29 + $0x38] sm:$0xff] %v2732_v10  ;;  %v4283_v49 = vmul.f32 %v4201_v29, %v5948_v5  ;;  %v4287_v47 = vmul.f32 %v4201_v29, %v5949_v25  ;;  %v4291_v63 = vmul.f32 %v4201_v29, %v3983_v50  ;;  %v5950_v10 = vld [vmem:[#allocation16_spill] sm:$0xff] }
 0x272   : > { %v1040_v55 = vpack.c.bf16 %v982_v0, %v980_v21  ;;  %v1042_v26 = vpack.c.bf16 %v4235_v56, %v4231_v36  ;;  %v2733_v45 = vpack.c.bf16 %v4260_v33, %v4195_v60  ;;  %v2734_v41 = vpack.c.bf16 %v4264_v51, %v4199_v38 }
 0x273   : > { %v1044_v20 = vpack.c.bf16 %v4264_v51, %v4260_v33  ;;  %v2735_v50 = vpack.c.bf16 %v4268_v30, %v4207_v14  ;;  %v2736_v0 = vpack.c.bf16 %v4272_v15, %v4211_v23  ;;  %v2737_v21 = vpack.c.bf16 %v4279_v13, %v4215_v3  ;;  %1070 = vmatpush1.bf16.msra.mxu1 %v1037_v31 }
 0x274   : > { %1276 = vst [vmem:[%s4246_s29 + $0x40] sm:$0xff] %v2733_v45  ;;  %1277 = vst [vmem:[%s4246_s29 + $0x48] sm:$0xff] %v2734_v41  ;;  %v2738_v36 = vpack.c.bf16 %v4283_v49, %v4239_v9  ;;  %v1050_v56 = vpack.c.bf16 %v4291_v63, %v4287_v47  ;;  %v2739_v44 = vpack.c.bf16 %v4287_v47, %v4066_v54  ;;  %1071 = vmatprep.subr.bf16.mxu1 %v1040_v55 }
 0x275   : > { %v2740_v17 = vpack.c.bf16 %v4291_v63, %v4070_v57  ;;  %1278 = vst [vmem:[%s4246_s29 + $0x50] sm:$0xff] %v2735_v50  ;;  %1279 = vst [vmem:[%s4246_s29 + $0x58] sm:$0xff] %v2736_v0  ;;  %v4322_v31 = vmul.f32 %v4201_v29, %v3990_v62  ;;  %v4326_v46 = vmul.f32 %v4201_v29, %v3996_v32 }
 0x276   : > { %1280 = vst [vmem:[%s4246_s29 + $0x60] sm:$0xff] %v2737_v21  ;;  %v4330_v33 = vmul.f32 %v4201_v29, %v5950_v10  ;;  %v4334_v51 = vmul.f32 %v4201_v29, %v4008_v22  ;;  %1281 = vst [vmem:[%s4246_s29 + $0x68] sm:$0xff] %v2738_v36  ;;  %v4341_v62 = vmul.f32 %v4201_v29, %v4014_v53 }
 0x277   : > { %1282 = vst [vmem:[%s4246_s29 + $0x70] sm:$0xff] %v2739_v44  ;;  %1283 = vst [vmem:[%s4246_s29 + $0x78] sm:$0xff] %v2740_v17  ;;  %v4345_v32 = vmul.f32 %v4201_v29, %v4020_v7  ;;  %v4349_v1 = vmul.f32 %v4201_v29, %v4029_v35  ;;  %v4353_v22 = vmul.f32 %v4201_v29, %v4032_v24  ;;  %v5952_v17 = vld [vmem:[#allocation17_spill] sm:$0xff] }
 0x278   : > { %v1052_v61 = vpack.c.bf16 %v4326_v46, %v4322_v31  ;;  %v2741_v53 = vpack.c.bf16 %v4322_v31, %v4076_v43  ;;  %v2742_v7 = vpack.c.bf16 %v4326_v46, %v4080_v12  ;;  %v1054_v35 = vpack.c.bf16 %v4334_v51, %v4330_v33  ;;  %v5954_v46 = vld [vmem:[#allocation18_spill] sm:$0xff] }
 0x279   : > { %v5951_v5 = vpack.c.bf16 %v4175_v48, %v4171_v19  ;;  %v2743_v24 = vpack.c.bf16 %v4330_v33, %v4087_v11  ;;  %v2744_v25 = vpack.c.bf16 %v4334_v51, %v4091_v27  ;;  %v1056_v55 = vpack.c.bf16 %v4345_v32, %v4341_v62  ;;  %v5955_v33 = vld [vmem:[#allocation19_spill] sm:$0xff] }
 0x27a   : > { %v2745_v45 = vpack.c.bf16 %v4341_v62, %v4097_v18  ;;  %1284 = vst [vmem:[%s4246_s29 + $0x80] sm:$0xff] %v2741_v53  ;;  %1285 = vst [vmem:[%s4246_s29 + $0x88] sm:$0xff] %v2742_v7  ;;  %v2746_v19 = vpack.c.bf16 %v4345_v32, %v4101_v39  ;;  %v1058_v48 = vpack.c.bf16 %v4353_v22, %v4349_v1  ;;  %v5957_v62 = vld [vmem:[#allocation22_spill] sm:$0xff]  ;;  %v5959_v53 = vld [vmem:[#allocation25_spill] sm:$0xff] }
 0x27b   : > { %1072 = vmatpush1.bf16.msra.mxu1 %v5951_v5  ;;  %v2747_v41 = vpack.c.bf16 %v4349_v1, %v4105_v34  ;;  %v2748_v50 = vpack.c.bf16 %v4353_v22, %v4111_v42  ;;  %1286 = vst [vmem:[%s4246_s29 + $0x90] sm:$0xff] %v2743_v24  ;;  %1287 = vst [vmem:[%s4246_s29 + $0x98] sm:$0xff] %v2744_v25  ;;  %v1022_v0 = vmul.f32 %v4201_v29, %v4044_v28  ;;  %v5960_v5 = vld [vmem:[#allocation26_spill] sm:$0xff] }
 0x27c   : > { %1073 = vmatprep.subr.bf16.mxu1 %v1042_v26  ;;  %1288 = vst [vmem:[%s4246_s29 + $0xa0] sm:$0xff] %v2745_v45  ;;  %v1020_v26 = vmul.f32 %v4201_v29, %v4038_v16  ;;  %v1024_v21 = vmul.f32 %v4201_v29, %v4047_v58  ;;  %v1026_v36 = vmul.f32 %v4201_v29, %v4050_v52  ;;  %1289 = vst [vmem:[%s4246_s29 + $0xa8] sm:$0xff] %v2746_v19 }
 0x27d   : > { %1290 = vst [vmem:[%s4246_s29 + $0xb0] sm:$0xff] %v2747_v41  ;;  %1291 = vst [vmem:[%s4246_s29 + $0xb8] sm:$0xff] %v2748_v50  ;;  %v1028_v44 = vmul.f32 %v4201_v29, %v4053_v59  ;;  %v1030_v16 = vmul.f32 %v4201_v29, %v4055_v4  ;;  %v1032_v28 = vmul.f32 %v4201_v29, %v4061_v8  ;;  %v5956_v4 = vld [vmem:[#allocation20_spill] sm:$0xff] }
 0x27e   : > { %v1034_v58 = vmul.f32 %v4201_v29, %v5952_v17  ;;  %v5953_v52 = vpack.c.bf16 %v4186_v2, %v4182_v6  ;;  %v1060_v31 = vpack.c.bf16 %v1022_v0, %v1020_v26  ;;  %v2749_v10 = vpack.c.bf16 %v1020_v26, %v5954_v46  ;;  %v5958_v2 = vld [vmem:[#allocation23_spill] sm:$0xff] }
 0x27f   : > { %v2750_v59 = vpack.c.bf16 %v1022_v0, %v5955_v33  ;;  %v1062_v51 = vpack.c.bf16 %v1026_v36, %v1024_v21  ;;  %v2751_v8 = vpack.c.bf16 %v1024_v21, %v5956_v4  ;;  %v2752_v29 = vpack.c.bf16 %v1026_v36, %v5957_v62 }
 0x280   : > { %1074 = vmatpush1.bf16.msra.mxu1 %v5953_v52  ;;  %v1064_v32 = vpack.c.bf16 %v1030_v16, %v1028_v44  ;;  %v2753_v6 = vpack.c.bf16 %v1028_v44, %v4135_v40  ;;  %1292 = vst [vmem:[%s4246_s29 + $0xc0] sm:$0xff] %v2749_v10  ;;  %v2754_v1 = vpack.c.bf16 %v1030_v16, %v5958_v2 }
 0x281   : > { %1075 = vmatprep.subr.bf16.mxu1 %v1044_v20  ;;  %1293 = vst [vmem:[%s4246_s29 + $0xc8] sm:$0xff] %v2750_v59  ;;  %v1066_v22 = vpack.c.bf16 %v1034_v58, %v1032_v28  ;;  %v2755_v7 = vpack.c.bf16 %v1032_v28, %v5959_v53  ;;  %v2756_v24 = vpack.c.bf16 %v1034_v58, %v5960_v5  ;;  %1294 = vst [vmem:[%s4246_s29 + $0xd0] sm:$0xff] %v2751_v8 }
 0x282   : > { %v1046_v20 = vpack.c.bf16 %v4272_v15, %v4268_v30  ;;  %1295 = vst [vmem:[%s4246_s29 + $0xd8] sm:$0xff] %v2752_v29  ;;  %1296 = vst [vmem:[%s4246_s29 + $0xe0] sm:$0xff] %v2753_v6  ;;  %v1045_v25 = vpack.c.bf16 %v4211_v23, %v4207_v14  ;;  %v1048_v45 = vpack.c.bf16 %v4283_v49, %v4279_v13  ;;  %v326_v49 = vld [vmem:[%s5683_s3] sm:$0xff] }
 0x283   : > { %1297 = vst [vmem:[%s4246_s29 + $0xe8] sm:$0xff] %v2754_v1  ;;  %1298 = vst [vmem:[%s4246_s29 + $0xf0] sm:$0xff] %v2755_v7  ;;  %v1047_v30 = vpack.c.bf16 %v4239_v9, %v4215_v3  ;;  %v5961_v60 = vpack.c.bf16 %v4070_v57, %v4066_v54  ;;  %v5962_v38 = vpack.c.bf16 %v4080_v12, %v4076_v43 }
 0x284   : > { %1076 = vmatpush1.bf16.msra.mxu1 %v1043_v37  ;;  %1299 = vst [vmem:[%s4246_s29 + $0xf8] sm:$0xff] %v2756_v24  ;;  %v5963_v14 = vpack.c.bf16 %v4091_v27, %v4087_v11  ;;  %v5964_v23 = vpack.c.bf16 %v4101_v39, %v4097_v18  ;;  %v5965_v54 = vpack.c.bf16 %v4111_v42, %v4105_v34  ;;  %v330_v11 = vld [vmem:[%s3966_s24] sm:$0xff]  ;;  %v5970_v39 = vmov 0   ;;  %v2625_v34 = vld [vmem:[%s3343_s14 + $0x8] sm:$0x77] }
 0x285   : > { %1077 = vmatprep.subr.bf16.mxu1 %v1046_v20  ;;  %v5966_v57 = vpack.c.bf16 %v5955_v33, %v5954_v46  ;;  %v5967_v43 = vpack.c.bf16 %v5957_v62, %v5956_v4  ;;  %v5968_v12 = vpack.c.bf16 %v5958_v2, %v4135_v40  ;;  %v969_v27 = vpack.c.bf16 %v330_v11, %v330_v11 }
 0x286   : > { %v5969_v18 = vpack.c.bf16 %v5960_v5, %v5959_v53  ;;  %v1363_v42 = vmul.f32 0.57735026, %v2625_v34  ;;  %v4475_v19 = vpack.c.bf16 %v326_v49, %v326_v49 }
 0x288   : > { %1078 = vmatpush1.bf16.msra.mxu1 %v1045_v25  ;;  %v1365_v3 = vcombine.high %v1363_v42, %v1363_v42  ;;  %v1367_v15 = vpack.c.bf16 %v1363_v42, %v1363_v42  ;;  %5972 = vst [vmem:[#allocation27_spill] sm:$0xff] %v4475_v19 }
 0x289   : > { %1079 = vmatprep.subr.bf16.mxu1 %v1048_v45 }
 0x28a   : > { %v1368_v9 = vpack.c.bf16 %v1365_v3, %v1365_v3 }
 0x28c   : > { %1080 = vmatpush1.bf16.msra.mxu1 %v1047_v30 }
 0x28d   : > { %1081 = vmatprep.subr.bf16.mxu1 %v1050_v56  ;;  %v5971_v56 = vld [vmem:[#allocation8_spill] sm:$0xff] }
 0x290   : > { %1082 = vmatpush1.bf16.msra.mxu1 %v5961_v60 }
 0x291   : > { %1083 = vmatprep.subr.bf16.mxu1 %v1052_v61  ;;  %v1458_v61 = vand.u32 %v1368_v9, %v5971_v56 }
 0x294   : > { %1084 = vmatpush1.bf16.msra.mxu1 %v5962_v38 }
 0x295   : > { %1085 = vmatprep.subr.bf16.mxu1 %v1054_v35 }
 0x296   : > { %v1382_v41 = vpop.trf.xlu1 }
 0x298   : > { %1086 = vmatpush1.bf16.msra.mxu1 %v5963_v14 }
 0x299   : > { %1087 = vmatprep.subr.bf16.mxu1 %v1056_v55 }
 0x29a   : > { %v1383_v50 = vpop.trf.xlu1 }
 0x29c   : > { %1088 = vmatpush1.bf16.msra.mxu1 %v5964_v23 }
 0x29d   : > { %1089 = vmatprep.subr.bf16.mxu1 %v1058_v48  ;;  %v1455_v48 = vand.u32 %v1367_v15, %v5971_v56 }
 0x29e   : > { %v1384_v26 = vpop.trf.xlu1 }
 0x2a0   : > { %1090 = vmatpush1.bf16.msra.mxu1 %v5965_v54 }
 0x2a1   : > { %1091 = vmatprep.subr.bf16.mxu1 %v1060_v31 }
 0x2a2   : > { %v1385_v0 = vpop.trf.xlu1 }
 0x2a4   : > { %1092 = vmatpush1.bf16.msra.mxu1 %v5966_v57 }
 0x2a5   : > { %1093 = vmatprep.subr.bf16.mxu1 %v1062_v51 }
 0x2a6   : > { %v1386_v21 = vpop.trf.xlu1 }
 0x2a8   : > { %1094 = vmatpush1.bf16.msra.mxu1 %v5967_v43 }
 0x2a9   : > { %1095 = vmatprep.subr.bf16.mxu1 %v1064_v32 }
 0x2aa   : > { %v1387_v36 = vpop.trf.xlu1 }
 0x2ac   : > { %1096 = vmatpush1.bf16.msra.mxu1 %v5968_v12 }
 0x2ad   : > { %1097 = vmatprep.subr.bf16.mxu1 %v1066_v22 }
 0x2ae   : > { %v1388_v44 = vpop.trf.xlu1 }
 0x2b0   : > { %1098 = vmatpush1.bf16.msra.mxu1 %v5969_v18 }
 0x2b2   : > { %v1389_v16 = vpop.trf.xlu1 }
 0x2b3   : > { %1100 = vmatmul.mubr.bf16.vlgmr.msra.gmra.mrb[0].mxu1 %v969_v27 }
 0x2b4   : > { %1345 = vmatprep.mubr.bf16.mxu1 %v5970_v39 }
 0x2b6   : > { %v1398_v28 = vpop.trf.xlu1 }
 0x2ba   : > { %v1399_v17 = vpop.trf.xlu1 }
 0x2be   : > { %v1400_v58 = vpop.trf.xlu1 }
 0x2c2   : > { %v1401_v52 = vpop.trf.xlu1 }
 0x2c6   : > { %v1402_v31 = vpop.trf.xlu1 }
 0x2ca   : > { %v1403_v46 = vpop.trf.xlu1 }
 0x2ce   : > { %v1404_v10 = vpop.trf.xlu1 }
 0x2d2   : > { %v1405_v33 = vpop.trf.xlu1 }
 0x386   : > { %v1101_v37 = vpop.f32.mrb[0].mxu1 }
 0x387   : > { %v1300_v13 = vpack.c.bf16 %v1101_v37, %v1101_v37  ;;  %v1103_v40 = vpop.f32.mrb[1].mxu1 }
 0x388   : > { %v1301_v47 = vpack.c.bf16 %v1103_v40, %v1103_v40  ;;  %v1105_v63 = vpop.f32.mrb[2].mxu1 }
 0x389   : > { %v1308_v35 = vsel %vm1306_vm3, %v1300_v13, 0  ;;  %v1106_v55 = vpop.f32.mrb[3].mxu1 }
 0x38a   : > { %2622 = vmatprep.subr.msk.bf16.mxu1 %vm1306_vm3, %v1301_v47 }
 0x38b   : > { %1314 = vmatpush1.bf16.msra.mxu1 %v1308_v35 }
 0x38c   : > { %1460 = vmatprep.subr.bf16.mxu1 %v1458_v61 }
 0x38e   : > { %2623 = vmatmul.mubr.msk.bf16.vlgmr.msra.gmra.mrb[4].mxu1 %vm1302_vm4, %v4475_v19 }
 0x38f   : > { %1461 = vmatpush1.bf16.msra.mxu1 %v1455_v48  ;;  %1492 = vmatprep.mubr.bf16.mxu1 %v5970_v39 }
 0x396   : > { %2628 = vmatmul.mubr.msk.bf16.vlgmr.msra.gmra.mrb[8].mxu1 %vm375_vm2, %v1382_v41 }
 0x397   : > { %1502 = vmatprep.mubr.bf16.mxu1 %v5970_v39 }
 0x39e   : > { %2629 = vmatmul.mubr.msk.bf16.gmra.mrb[12].mxu1 %vm375_vm2, %v1383_v50 }
 0x39f   : > { %1512 = vmatprep.mubr.bf16.mxu1 %v5970_v39 }
 0x3a6   : > { %2630 = vmatmul.mubr.msk.bf16.gmra.mrb[16].mxu1 %vm375_vm2, %v1384_v26 }
 0x3a7   : > { %1522 = vmatprep.mubr.bf16.mxu1 %v5970_v39 }
 0x3ae   : > { %2631 = vmatmul.mubr.msk.bf16.gmra.mrb[20].mxu1 %vm375_vm2, %v1385_v0 }
 0x3af   : > { %1532 = vmatprep.mubr.bf16.mxu1 %v5970_v39 }
 0x3b6   : > { %2632 = vmatmul.mubr.msk.bf16.gmra.mrb[24].mxu1 %vm375_vm2, %v1386_v21 }
 0x3b7   : > { %1542 = vmatprep.mubr.bf16.mxu1 %v5970_v39 }
 0x3be   : > { %2633 = vmatmul.mubr.msk.bf16.gmra.mrb[28].mxu1 %vm375_vm2, %v1387_v36 }
 0x3bf   : > { %1552 = vmatprep.mubr.bf16.mxu1 %v5970_v39 }
 0x3c6   : > { %2634 = vmatmul.mubr.msk.bf16.gmra.mrb[32].mxu1 %vm375_vm2, %v1388_v44 }
 0x3c7   : > { %1562 = vmatprep.mubr.bf16.mxu1 %v5970_v39 }
 0x3ce   : > { %2635 = vmatmul.mubr.msk.bf16.gmra.mrb[36].mxu1 %vm375_vm2, %v1389_v16 }
 0x3cf   : > { %1572 = vmatprep.mubr.bf16.mxu1 %v5970_v39 }
 0x3d6   : > { %2636 = vmatmul.mubr.msk.bf16.gmra.mrb[40].mxu1 %vm375_vm2, %v1398_v28 }
 0x3d7   : > { %1582 = vmatprep.mubr.bf16.mxu1 %v5970_v39 }
 0x3de   : > { %2637 = vmatmul.mubr.msk.bf16.gmra.mrb[44].mxu1 %vm375_vm2, %v1399_v17 }
 0x3df   : > { %1592 = vmatprep.mubr.bf16.mxu1 %v5970_v39 }
 0x3e6   : > { %2638 = vmatmul.mubr.msk.bf16.gmra.mrb[48].mxu1 %vm375_vm2, %v1400_v58 }
 0x3e7   : > { %1602 = vmatprep.mubr.bf16.mxu1 %v5970_v39 }
 0x3ee   : > { %2639 = vmatmul.mubr.msk.bf16.gmra.mrb[52].mxu1 %vm375_vm2, %v1401_v52 }
 0x3ef   : > { %1612 = vmatprep.mubr.bf16.mxu1 %v5970_v39 }
 0x3f6   : > { %2640 = vmatmul.mubr.msk.bf16.gmra.mrb[56].mxu1 %vm375_vm2, %v1402_v31 }
 0x3f7   : > { %1622 = vmatprep.mubr.bf16.mxu1 %v5970_v39 }
 0x3fe   : > { %2641 = vmatmul.mubr.msk.bf16.gmra.mrb[60].mxu1 %vm375_vm2, %v1403_v46 }
 0x3ff   : > { %1632 = vmatprep.mubr.bf16.mxu1 %v5970_v39 }
 0x406   : > { %2642 = vmatmul.mubr.msk.bf16.gmra.mrb[64].mxu1 %vm375_vm2, %v1404_v10 }
 0x407   : > { %1642 = vmatprep.mubr.bf16.mxu1 %v5970_v39 }
 0x40e   : > { %2643 = vmatmul.mubr.msk.bf16.gmra.mrb[68].mxu1 %vm375_vm2, %v1405_v33 }
 0x461   : > { %v1347_v59 = vpop.f32.mrb[4].mxu1 }
 0x462   : > { %1354 = vst [vmem:[%s4513_s10] sm:$0xff] %v1347_v59  ;;  %v1349_v51 = vpop.f32.mrb[5].mxu1 }
 0x463   : > { %1355 = vst [vmem:[%s4513_s10 + $0x8] sm:$0xff] %v1349_v51  ;;  %v1351_v4 = vpop.f32.mrb[6].mxu1 }
 0x464   : > { %v1352_v8 = vpop.f32.mrb[7].mxu1 }
 0x469   : > { %v4517_v62 = vpop.f32.mrb[8].mxu1 }
 0x46a   : > { %v4519_v29 = vpop.f32.mrb[9].mxu1 }
 0x46b   : > { %v4521_v32 = vpop.f32.mrb[10].mxu1 }
 0x46c   : > { %v4523_v6 = vpop.f32.mrb[11].mxu1 }
 0x471   : > { %v4525_v2 = vpop.f32.mrb[12].mxu1 }
 0x472   : > { %v1653_v1 = vmax.f32 %v4517_v62, %v4525_v2  ;;  %v4529_v22 = vpop.f32.mrb[13].mxu1 }
 0x473   : > { %v1690_v53 = vmax.f32 %v4519_v29, %v4529_v22  ;;  %v4533_v7 = vpop.f32.mrb[14].mxu1 }
 0x474   : > { %v1654_v5 = vmax.f32 %v4521_v32, %v4533_v7  ;;  %v4537_v24 = vpop.f32.mrb[15].mxu1 }
 0x475   : > { %v1691_v20 = vmax.f32 %v4523_v6, %v4537_v24 }
 0x479   : > { %v4541_v25 = vpop.f32.mrb[16].mxu1 }
 0x47a   : > { %v1655_v45 = vmax.f32 %v1653_v1, %v4541_v25  ;;  %v4544_v30 = vpop.f32.mrb[17].mxu1 }
 0x47b   : > { %v1692_v60 = vmax.f32 %v1690_v53, %v4544_v30  ;;  %v4547_v38 = vpop.f32.mrb[18].mxu1 }
 0x47c   : > { %v1656_v14 = vmax.f32 %v1654_v5, %v4547_v38  ;;  %v4550_v23 = vpop.f32.mrb[19].mxu1 }
 0x47d   : > { %v1693_v54 = vmax.f32 %v1691_v20, %v4550_v23 }
 0x481   : > { %v4553_v57 = vpop.f32.mrb[20].mxu1 }
 0x482   : > { %v1657_v43 = vmax.f32 %v1655_v45, %v4553_v57  ;;  %v4556_v12 = vpop.f32.mrb[21].mxu1 }
 0x483   : > { %v1694_v11 = vmax.f32 %v1692_v60, %v4556_v12  ;;  %v4559_v27 = vpop.f32.mrb[22].mxu1 }
 0x484   : > { %v1658_v18 = vmax.f32 %v1656_v14, %v4559_v27  ;;  %v4562_v34 = vpop.f32.mrb[23].mxu1 }
 0x485   : > { %v1695_v42 = vmax.f32 %v1693_v54, %v4562_v34 }
 0x489   : > { %v4565_v3 = vpop.f32.mrb[24].mxu1 }
 0x48a   : > { %v1659_v9 = vmax.f32 %v1657_v43, %v4565_v3  ;;  %v4568_v37 = vpop.f32.mrb[25].mxu1 }
 0x48b   : > { %v1696_v15 = vmax.f32 %v1694_v11, %v4568_v37  ;;  %v4571_v13 = vpop.f32.mrb[26].mxu1 }
 0x48c   : > { %v1660_v40 = vmax.f32 %v1658_v18, %v4571_v13  ;;  %v4574_v49 = vpop.f32.mrb[27].mxu1 }
 0x48d   : > { %v1697_v47 = vmax.f32 %v1695_v42, %v4574_v49 }
 0x491   : > { %v4577_v63 = vpop.f32.mrb[28].mxu1 }
 0x492   : > { %v1661_v56 = vmax.f32 %v1659_v9, %v4577_v63  ;;  %v4580_v61 = vpop.f32.mrb[29].mxu1 }
 0x493   : > { %v1698_v35 = vmax.f32 %v1696_v15, %v4580_v61  ;;  %v4583_v55 = vpop.f32.mrb[30].mxu1 }
 0x494   : > { %v1662_v48 = vmax.f32 %v1660_v40, %v4583_v55  ;;  %v4586_v41 = vpop.f32.mrb[31].mxu1 }
 0x495   : > { %5973 = vst [vmem:[#allocation28_spill] sm:$0xff] %v4586_v41  ;;  %v1699_v50 = vmax.f32 %v1697_v47, %v4586_v41 }
 0x499   : > { %v4589_v26 = vpop.f32.mrb[32].mxu1 }
 0x49a   : > { %v1663_v0 = vmax.f32 %v1661_v56, %v4589_v26  ;;  %v4592_v21 = vpop.f32.mrb[33].mxu1 }
 0x49b   : > { %5974 = vst [vmem:[#allocation21_spill] sm:$0xff] %v4592_v21  ;;  %v1700_v36 = vmax.f32 %v1698_v35, %v4592_v21  ;;  %v4595_v44 = vpop.f32.mrb[34].mxu1 }
 0x49c   : > { %v1664_v16 = vmax.f32 %v1662_v48, %v4595_v44  ;;  %v4598_v28 = vpop.f32.mrb[35].mxu1 }
 0x49d   : > { %5975 = vst [vmem:[#allocation24_spill] sm:$0xff] %v4598_v28  ;;  %v1701_v17 = vmax.f32 %v1699_v50, %v4598_v28 }
 0x4a1   : > { %v4601_v58 = vpop.f32.mrb[36].mxu1 }
 0x4a2   : > { %v1665_v52 = vmax.f32 %v1663_v0, %v4601_v58  ;;  %v4604_v31 = vpop.f32.mrb[37].mxu1 }
 0x4a3   : > { %5976 = vst [vmem:[#allocation29_spill] sm:$0xff] %v4604_v31  ;;  %v1702_v46 = vmax.f32 %v1700_v36, %v4604_v31  ;;  %v4607_v10 = vpop.f32.mrb[38].mxu1 }
 0x4a4   : > { %v1666_v33 = vmax.f32 %v1664_v16, %v4607_v10  ;;  %v4610_v59 = vpop.f32.mrb[39].mxu1 }
 0x4a5   : > { %5977 = vst [vmem:[#allocation30_spill] sm:$0xff] %v4610_v59  ;;  %v1703_v51 = vmax.f32 %v1701_v17, %v4610_v59 }
 0x4a9   : > { %v4613_v4 = vpop.f32.mrb[40].mxu1 }
 0x4aa   : > { %v1667_v8 = vmax.f32 %v1665_v52, %v4613_v4  ;;  %v4616_v1 = vpop.f32.mrb[41].mxu1 }
 0x4ab   : > { %5978 = vst [vmem:[#allocation31_spill] sm:$0xff] %v4616_v1  ;;  %v1704_v53 = vmax.f32 %v1702_v46, %v4616_v1  ;;  %v4619_v5 = vpop.f32.mrb[42].mxu1 }
 0x4ac   : > { %v1668_v20 = vmax.f32 %v1666_v33, %v4619_v5  ;;  %v4622_v45 = vpop.f32.mrb[43].mxu1 }
 0x4ad   : > { %5979 = vst [vmem:[#allocation9_spill] sm:$0xff] %v4622_v45  ;;  %v1705_v60 = vmax.f32 %v1703_v51, %v4622_v45 }
 0x4b1   : > { %v4625_v14 = vpop.f32.mrb[44].mxu1 }
 0x4b2   : > { %v1669_v54 = vmax.f32 %v1667_v8, %v4625_v14  ;;  %v4628_v43 = vpop.f32.mrb[45].mxu1 }
 0x4b3   : > { %5980 = vst [vmem:[#allocation10_spill] sm:$0xff] %v4628_v43  ;;  %v1706_v11 = vmax.f32 %v1704_v53, %v4628_v43  ;;  %v4631_v18 = vpop.f32.mrb[46].mxu1 }
 0x4b4   : > { %v1670_v42 = vmax.f32 %v1668_v20, %v4631_v18  ;;  %v4634_v9 = vpop.f32.mrb[47].mxu1 }
 0x4b5   : > { %5981 = vst [vmem:[#allocation11_spill] sm:$0xff] %v4634_v9  ;;  %v1707_v15 = vmax.f32 %v1705_v60, %v4634_v9 }
 0x4b9   : > { %v4637_v40 = vpop.f32.mrb[48].mxu1 }
 0x4ba   : > { %v1671_v47 = vmax.f32 %v1669_v54, %v4637_v40  ;;  %v4640_v56 = vpop.f32.mrb[49].mxu1 }
 0x4bb   : > { %5982 = vst [vmem:[#allocation12_spill] sm:$0xff] %v4640_v56  ;;  %v1708_v35 = vmax.f32 %v1706_v11, %v4640_v56  ;;  %v4643_v48 = vpop.f32.mrb[50].mxu1 }
 0x4bc   : > { %v1672_v50 = vmax.f32 %v1670_v42, %v4643_v48  ;;  %v4646_v0 = vpop.f32.mrb[51].mxu1 }
 0x4bd   : > { %5983 = vst [vmem:[#allocation13_spill] sm:$0xff] %v4646_v0  ;;  %v1709_v36 = vmax.f32 %v1707_v15, %v4646_v0 }
 0x4c1   : > { %v4649_v16 = vpop.f32.mrb[52].mxu1 }
 0x4c2   : > { %v1673_v17 = vmax.f32 %v1671_v47, %v4649_v16  ;;  %v4652_v52 = vpop.f32.mrb[53].mxu1 }
 0x4c3   : > { %5984 = vst [vmem:[#allocation14_spill] sm:$0xff] %v4652_v52  ;;  %v1710_v46 = vmax.f32 %v1708_v35, %v4652_v52  ;;  %v4655_v33 = vpop.f32.mrb[54].mxu1 }
 0x4c4   : > { %v1674_v51 = vmax.f32 %v1672_v50, %v4655_v33  ;;  %v4658_v8 = vpop.f32.mrb[55].mxu1 }
 0x4c5   : > { %5985 = vst [vmem:[#allocation15_spill] sm:$0xff] %v4658_v8  ;;  %v1711_v53 = vmax.f32 %v1709_v36, %v4658_v8 }
 0x4c9   : > { %v4661_v20 = vpop.f32.mrb[56].mxu1 }
 0x4ca   : > { %v1675_v60 = vmax.f32 %v1673_v17, %v4661_v20  ;;  %v4664_v54 = vpop.f32.mrb[57].mxu1 }
 0x4cb   : > { %5986 = vst [vmem:[#allocation16_spill] sm:$0xff] %v4664_v54  ;;  %v1712_v11 = vmax.f32 %v1710_v46, %v4664_v54  ;;  %v4667_v42 = vpop.f32.mrb[58].mxu1 }
 0x4cc   : > { %v1676_v15 = vmax.f32 %v1674_v51, %v4667_v42  ;;  %v4670_v47 = vpop.f32.mrb[59].mxu1 }
 0x4cd   : > { %5987 = vst [vmem:[#allocation17_spill] sm:$0xff] %v4670_v47  ;;  %v1713_v35 = vmax.f32 %v1711_v53, %v4670_v47 }
 0x4d1   : > { %v4673_v50 = vpop.f32.mrb[60].mxu1 }
 0x4d2   : > { %v1677_v36 = vmax.f32 %v1675_v60, %v4673_v50  ;;  %v4676_v19 = vpop.f32.mrb[61].mxu1 }
 0x4d3   : > { %5988 = vst [vmem:[#allocation18_spill] sm:$0xff] %v4676_v19  ;;  %v1714_v17 = vmax.f32 %v1712_v11, %v4676_v19  ;;  %v4679_v39 = vpop.f32.mrb[62].mxu1 }
 0x4d4   : > { %v1678_v46 = vmax.f32 %v1676_v15, %v4679_v39  ;;  %v4682_v54 = vpop.f32.mrb[63].mxu1 }
 0x4d5   : > { %5989 = vst [vmem:[#allocation19_spill] sm:$0xff] %v4682_v54  ;;  %v1715_v51 = vmax.f32 %v1713_v35, %v4682_v54 }
 0x4d9   : > { %v4685_v8 = vpop.f32.mrb[64].mxu1 }
 0x4da   : > { %v1679_v53 = vmax.f32 %v1677_v36, %v4685_v8  ;;  %v4688_v47 = vpop.f32.mrb[65].mxu1 }
 0x4db   : > { %5990 = vst [vmem:[#allocation20_spill] sm:$0xff] %v4688_v47  ;;  %v1716_v60 = vmax.f32 %v1714_v17, %v4688_v47  ;;  %v4691_v52 = vpop.f32.mrb[66].mxu1 }
 0x4dc   : > { %v1680_v11 = vmax.f32 %v1678_v46, %v4691_v52  ;;  %v4694_v19 = vpop.f32.mrb[67].mxu1 }
 0x4dd   : > { %5991 = vst [vmem:[#allocation22_spill] sm:$0xff] %v4694_v19  ;;  %v1717_v15 = vmax.f32 %v1715_v51, %v4694_v19 }
 0x4e1   : > { %v4697_v0 = vpop.f32.mrb[68].mxu1 }
 0x4e2   : > { %v1681_v35 = vmax.f32 %v1679_v53, %v4697_v0  ;;  %v4700_v54 = vpop.f32.mrb[69].mxu1 }
 0x4e3   : > { %5992 = vst [vmem:[#allocation23_spill] sm:$0xff] %v4700_v54  ;;  %v1718_v36 = vmax.f32 %v1716_v60, %v4700_v54  ;;  %v4703_v56 = vpop.f32.mrb[70].mxu1 }
 0x4e4   : > { %v1682_v17 = vmax.f32 %v1680_v11, %v4703_v56  ;;  %v4706_v47 = vpop.f32.mrb[71].mxu1 }
 0x4e5   : > { %5993 = vst [vmem:[#allocation25_spill] sm:$0xff] %v4706_v47  ;;  %v1719_v46 = vmax.f32 %v1717_v15, %v4706_v47 }
 0x4e6   : > { %v1683_v9 = vmax.f32 %v1681_v35, %v1682_v17 }
 0x4e7   : > { %v1720_v43 = vmax.f32 %v1718_v36, %v1719_v46 }
 0x4e8   : > { %v1684_v45 = vrot.slane %v1683_v9, 4 }
 0x4e9   : > { %v1721_v51 = vrot.slane %v1720_v43, 4 }
 0x4ea   : > { %v1685_v19 = vmax.f32 %v1683_v9, %v1684_v45 }
 0x4eb   : > { %v1722_v1 = vmax.f32 %v1720_v43, %v1721_v51 }
 0x4ec   : > { %v1686_v59 = vrot.slane %v1685_v19, 2 }
 0x4ed   : > { %v1723_v53 = vrot.slane %v1722_v1, 2 }
 0x4ee   : > { %v1687_v31 = vmax.f32 %v1685_v19, %v1686_v59 }
 0x4ef   : > { %v1724_v28 = vmax.f32 %v1722_v1, %v1723_v53 }
 0x4f0   : > { %v1688_v21 = vrot.slane %v1687_v31, 1 }
 0x4f1   : > { %v1725_v60 = vrot.slane %v1724_v28, 1 }
 0x4f2   : > { %v4709_v54 = vmax.f32 %v1687_v31, %v1688_v21 }
 0x4f3   : > { %v4711_v41 = vmax.f32 %v1724_v28, %v1725_v60 }
 0x4f4   : > { %v1727_v11 = vsub.f32 %v4517_v62, %v4709_v54  ;;  %v1729_v15 = vsub.f32 %v4521_v32, %v4709_v54  ;;  %v1731_v45 = vsub.f32 %v4525_v2, %v4709_v54  ;;  %v1733_v43 = vsub.f32 %v4533_v7, %v4709_v54 }
 0x4f5   : > { %v1735_v19 = vsub.f32 %v4541_v25, %v4709_v54  ;;  %v1737_v21 = vsub.f32 %v4547_v38, %v4709_v54  ;;  %v1739_v28 = vsub.f32 %v4553_v57, %v4709_v54  ;;  %v1741_v62 = vsub.f32 %v4559_v27, %v4709_v54  ;;  %v6016_v57 = vld [vmem:[#allocation19_spill] sm:$0xff] }
 0x4f6   : > { %v1743_v32 = vsub.f32 %v4565_v3, %v4709_v54  ;;  %v1745_v2 = vsub.f32 %v4571_v13, %v4709_v54  ;;  %v1747_v7 = vsub.f32 %v4577_v63, %v4709_v54  ;;  %v1749_v25 = vsub.f32 %v4583_v55, %v4709_v54  ;;  %v6009_v63 = vld [vmem:[#allocation14_spill] sm:$0xff]  ;;  %v6012_v3 = vld [vmem:[#allocation16_spill] sm:$0xff] }
 0x4f7   : > { %v1791_v9 = vmul.f32 1.442695, %v1727_v11  ;;  %v1795_v46 = vmul.f32 1.442695, %v1729_v15  ;;  %v1799_v1 = vmul.f32 1.442695, %v1731_v45  ;;  %v6021_v55 = vsub.f32 %v4601_v58, %v4709_v54 }
 0x4f8   : > { %v1803_v60 = vmul.f32 1.442695, %v1733_v43  ;;  %v1807_v35 = vmul.f32 1.442695, %v1735_v19  ;;  %v1811_v59 = vmul.f32 1.442695, %v1737_v21  ;;  %v6024_v58 = vsub.f32 %v4619_v5, %v4709_v54 }
 0x4f9   : > { %2993 = vpow2.f32 %v1791_v9  ;;  %v1815_v36 = vmul.f32 1.442695, %v1739_v28  ;;  %v1819_v31 = vmul.f32 1.442695, %v1741_v62  ;;  %v1823_v19 = vmul.f32 1.442695, %v1743_v32 }
 0x4fa   : > { %2995 = vpow2.f32 %v1795_v46  ;;  %v5996_v32 = vld [vmem:[#allocation28_spill] sm:$0xff]  ;;  %v5997_v28 = vld [vmem:[#allocation21_spill] sm:$0xff]  ;;  %v1831_v11 = vmul.f32 1.442695, %v1747_v7  ;;  %v6004_v43 = vld [vmem:[#allocation10_spill] sm:$0xff] }
 0x4fb   : > { %2997 = vpow2.f32 %v1799_v1  ;;  %v5998_v62 = vld [vmem:[#allocation24_spill] sm:$0xff]  ;;  %v6000_v9 = vld [vmem:[#allocation29_spill] sm:$0xff]  ;;  %v1847_v45 = vmul.f32 1.442695, %v6021_v55  ;;  %v1859_v55 = vmul.f32 1.442695, %v6024_v58 }
 0x4fc   : > { %2999 = vpow2.f32 %v1803_v60  ;;  %v1827_v60 = vmul.f32 1.442695, %v1745_v2  ;;  %v6002_v2 = vld [vmem:[#allocation31_spill] sm:$0xff]  ;;  %v6003_v21 = vld [vmem:[#allocation9_spill] sm:$0xff]  ;;  %v6007_v15 = vld [vmem:[#allocation12_spill] sm:$0xff] }
 0x4fd   : > { %3001 = vpow2.f32 %v1807_v35  ;;  %v6001_v35 = vld [vmem:[#allocation30_spill] sm:$0xff]  ;;  %v6008_v46 = vld [vmem:[#allocation13_spill] sm:$0xff] }
 0x4fe   : > { %3003 = vpow2.f32 %v1811_v59  ;;  %v6013_v7 = vld [vmem:[#allocation17_spill] sm:$0xff] }
 0x4ff   : > { %3005 = vpow2.f32 %v1815_v36 }
 0x500   : > { %3007 = vpow2.f32 %v1819_v31  ;;  %v6006_v31 = vld [vmem:[#allocation11_spill] sm:$0xff] }
 0x501   : > { %3009 = vpow2.f32 %v1823_v19 }
 0x502   : > { %3011 = vpow2.f32 %v1827_v60  ;;  %v6017_v60 = vld [vmem:[#allocation20_spill] sm:$0xff] }
 0x503   : > { %v4789_v1 = vpop.eup %2993  ;;  %3013 = vpow2.f32 %v1831_v11 }
 0x504   : > { %5994 = vst [vmem:[#allocation26_spill] sm:$0xff] %v4789_v1  ;;  %v4797_v59 = vpop.eup %2995 }
 0x505   : > { %5995 = vst [vmem:[#allocation8_spill] sm:$0xff] %v4797_v59  ;;  %v1919_v17 = vadd.f32 %v4797_v59, %v4789_v1  ;;  %v4811_v36 = vpop.eup %2997  ;;  %v6020_v1 = vsub.f32 %v4595_v44, %v4709_v54  ;;  %v6023_v44 = vsub.f32 %v4613_v4, %v4709_v54  ;;  %v6026_v4 = vsub.f32 %v4523_v6, %v4711_v41 }
 0x506   : > { %5999 = vst [vmem:[#allocation28_spill] sm:$0xff] %v4811_v36  ;;  %v4824_v13 = vpop.eup %2999 }
 0x507   : > { %v1920_v53 = vadd.f32 %v4811_v36, %v1919_v17  ;;  %6005 = vst [vmem:[#allocation21_spill] sm:$0xff] %v4824_v13  ;;  %v1835_v17 = vmul.f32 1.442695, %v1749_v25  ;;  %v4840_v38 = vpop.eup %3001  ;;  %v6018_v36 = vld [vmem:[#allocation22_spill] sm:$0xff]  ;;  %v6019_v25 = vld [vmem:[#allocation23_spill] sm:$0xff] }
 0x508   : > { %6011 = vst [vmem:[#allocation24_spill] sm:$0xff] %v4840_v38  ;;  %v4856_v19 = vpop.eup %3003  ;;  %v1843_v59 = vmul.f32 1.442695, %v6020_v1  ;;  %v1855_v1 = vmul.f32 1.442695, %v6023_v44 }
 0x509   : > { %v1921_v51 = vadd.f32 %v4824_v13, %v1920_v53  ;;  %v6015_v53 = vsub.f32 %v4589_v26, %v4709_v54  ;;  %3015 = vpow2.f32 %v1835_v17 }
 0x50b   : > { %v1839_v13 = vmul.f32 1.442695, %v6015_v53  ;;  %v1922_v27 = vadd.f32 %v4840_v38, %v1921_v51  ;;  %v4865_v53 = vpop.eup %3005 }
 0x50c   : > { %v4871_v38 = vpop.eup %3007 }
 0x50d   : > { %v1923_v51 = vadd.f32 %v4856_v19, %v1922_v27  ;;  %3017 = vpow2.f32 %v1839_v13  ;;  %v4877_v47 = vpop.eup %3009  ;;  %v6022_v27 = vsub.f32 %v4607_v10, %v4709_v54 }
 0x50e   : > { %3019 = vpow2.f32 %v1843_v59  ;;  %v4886_v13 = vpop.eup %3011  ;;  %v6025_v59 = vsub.f32 %v4519_v29, %v4711_v41  ;;  %v6028_v29 = vsub.f32 %v4529_v22, %v4711_v41 }
 0x50f   : > { %v1924_v11 = vadd.f32 %v4865_v53, %v1923_v51  ;;  %v1851_v17 = vmul.f32 1.442695, %v6022_v27  ;;  %3021 = vpow2.f32 %v1847_v45  ;;  %v4895_v27 = vpop.eup %3013  ;;  %v6027_v45 = vsub.f32 %v4625_v14, %v4709_v54 }
 0x510   : > { %v1793_v10 = vmul.f32 1.442695, %v6025_v59  ;;  %v6030_v14 = vsub.f32 %v4537_v24, %v4711_v41 }
 0x511   : > { %v1925_v26 = vadd.f32 %v4871_v38, %v1924_v11  ;;  %3023 = vpow2.f32 %v1851_v17  ;;  %v1863_v44 = vmul.f32 1.442695, %v6027_v45  ;;  %v6029_v17 = vsub.f32 %v4631_v18, %v4709_v54 }
 0x512   : > { %3025 = vpow2.f32 %v1855_v1  ;;  %v6032_v18 = vsub.f32 %v4544_v30, %v4711_v41 }
 0x513   : > { %v1926_v51 = vadd.f32 %v4877_v47, %v1925_v26  ;;  %v1797_v26 = vmul.f32 1.442695, %v6026_v4  ;;  %v4904_v58 = vpop.eup %3015  ;;  %3027 = vpow2.f32 %v1859_v55  ;;  %v1867_v59 = vmul.f32 1.442695, %v6029_v17 }
 0x514   : > { %3029 = vpow2.f32 %v1793_v10  ;;  %v6031_v55 = vsub.f32 %v4637_v40, %v4709_v54  ;;  %v1809_v10 = vmul.f32 1.442695, %v6032_v18  ;;  %v6034_v40 = vsub.f32 %v4550_v23, %v4711_v41 }
 0x515   : > { %v1927_v11 = vadd.f32 %v4886_v13, %v1926_v51  ;;  %v1801_v51 = vmul.f32 1.442695, %v6028_v29  ;;  %3031 = vpow2.f32 %v1797_v26  ;;  %v6033_v26 = vsub.f32 %v4643_v48, %v4709_v54 }
 0x516   : > { %3033 = vpow2.f32 %v1863_v44  ;;  %v1871_v22 = vmul.f32 1.442695, %v6031_v55  ;;  %v1813_v29 = vmul.f32 1.442695, %v6034_v40  ;;  %v6036_v48 = vsub.f32 %v4556_v12, %v4711_v41 }
 0x517   : > { %v1928_v5 = vadd.f32 %v4895_v27, %v1927_v11  ;;  %v4913_v1 = vpop.eup %3017  ;;  %v1805_v11 = vmul.f32 1.442695, %v6030_v14  ;;  %3035 = vpow2.f32 %v1801_v51  ;;  %v1875_v24 = vmul.f32 1.442695, %v6033_v26 }
 0x518   : > { %v4922_v45 = vpop.eup %3019  ;;  %3037 = vpow2.f32 %v1867_v59  ;;  %v6035_v51 = vsub.f32 %v4649_v16, %v4709_v54  ;;  %v6037_v23 = vsub.f32 %v4655_v33, %v4709_v54  ;;  %v6039_v12 = vsub.f32 %v4661_v20, %v4709_v54 }
 0x519   : > { %v1929_v6 = vadd.f32 %v4904_v58, %v1928_v5  ;;  %v4931_v5 = vpop.eup %3021  ;;  %3039 = vpow2.f32 %v1805_v11 }
 0x51a   : > { %3041 = vpow2.f32 %v1871_v22  ;;  %v1879_v30 = vmul.f32 1.442695, %v6035_v51  ;;  %v1883_v11 = vmul.f32 1.442695, %v6037_v23  ;;  %v6038_v22 = vsub.f32 %v4562_v34, %v4711_v41 }
 0x51b   : > { %v1930_v4 = vadd.f32 %v4913_v1, %v1929_v6  ;;  %v4940_v59 = vpop.eup %3023  ;;  %3043 = vpow2.f32 %v1809_v10  ;;  %v1817_v6 = vmul.f32 1.442695, %v6036_v48  ;;  %v1887_v10 = vmul.f32 1.442695, %v6039_v12 }
 0x51c   : > { %v4945_v14 = vpop.eup %3025  ;;  %3045 = vpow2.f32 %v1875_v24  ;;  %v6040_v24 = vsub.f32 %v4568_v37, %v4711_v41  ;;  %v6041_v34 = vsub.f32 %v4667_v42, %v4709_v54  ;;  %v6045_v12 = vsub.f32 %v4679_v39, %v4709_v54 }
 0x51d   : > { %v1931_v44 = vadd.f32 %v4922_v45, %v1930_v4  ;;  %v4951_v16 = vpop.eup %3027  ;;  %3047 = vpow2.f32 %v1813_v29  ;;  %v1821_v4 = vmul.f32 1.442695, %v6038_v22  ;;  %v6044_v22 = vsub.f32 %v4580_v61, %v4711_v41 }
 0x51e   : > { %v4956_v18 = vpop.eup %3029  ;;  %3049 = vpow2.f32 %v1879_v30  ;;  %v1891_v29 = vmul.f32 1.442695, %v6041_v34 }
 0x51f   : > { %v1932_v17 = vadd.f32 %v4931_v5, %v1931_v44  ;;  %v4962_v33 = vpop.eup %3031  ;;  %3051 = vpow2.f32 %v1817_v6  ;;  %v1825_v44 = vmul.f32 1.442695, %v6040_v24  ;;  %v6043_v6 = vsub.f32 %v4673_v50, %v4709_v54 }
 0x520   : > { %v4967_v40 = vpop.eup %3033  ;;  %3053 = vpow2.f32 %v1883_v11  ;;  %v1956_v20 = vadd.f32 %v4962_v33, %v4956_v18 }
 0x521   : > { %v1933_v55 = vadd.f32 %v4940_v59, %v1932_v17  ;;  %v4975_v30 = vpop.eup %3035  ;;  %3055 = vpow2.f32 %v1821_v4  ;;  %v6042_v17 = vsub.f32 %v4574_v49, %v4711_v41  ;;  %v1895_v42 = vmul.f32 1.442695, %v6043_v6 }
 0x522   : > { %v4980_v48 = vpop.eup %3037  ;;  %3057 = vpow2.f32 %v1887_v10  ;;  %v1957_v11 = vadd.f32 %v4975_v30, %v1956_v20  ;;  %v1833_v4 = vmul.f32 1.442695, %v6044_v22  ;;  %v1899_v10 = vmul.f32 1.442695, %v6045_v12 }
 0x523   : > { %v1934_v26 = vadd.f32 %v4945_v14, %v1933_v55  ;;  %v1829_v37 = vmul.f32 1.442695, %v6042_v17  ;;  %v4987_v55 = vpop.eup %3039  ;;  %3059 = vpow2.f32 %v1825_v44  ;;  %v6046_v44 = vsub.f32 %v5996_v32, %v4711_v41 }
 0x524   : > { %v4992_v49 = vpop.eup %3041  ;;  %3061 = vpow2.f32 %v1891_v29  ;;  %v6047_v29 = vsub.f32 %v4685_v8, %v4709_v54 }
 0x525   : > { %v1935_v51 = vadd.f32 %v4951_v16, %v1934_v26  ;;  %v1958_v26 = vadd.f32 %v4987_v55, %v1957_v11  ;;  %v4999_v24 = vpop.eup %3043  ;;  %3063 = vpow2.f32 %v1829_v37  ;;  %v1837_v34 = vmul.f32 1.442695, %v6046_v44 }
 0x526   : > { %v5004_v61 = vpop.eup %3045  ;;  %3065 = vpow2.f32 %v1895_v42  ;;  %v6048_v37 = vsub.f32 %v5997_v28, %v4711_v41  ;;  %v6049_v42 = vsub.f32 %v4691_v52, %v4709_v54 }
 0x527   : > { %v1936_v23 = vadd.f32 %v4967_v40, %v1935_v51  ;;  %v1903_v51 = vmul.f32 1.442695, %v6047_v29  ;;  %v1959_v20 = vadd.f32 %v4999_v24, %v1958_v26  ;;  %v5011_v17 = vpop.eup %3047  ;;  %3067 = vpow2.f32 %v1833_v4 }
 0x528   : > { %v1841_v6 = vmul.f32 1.442695, %v6048_v37  ;;  %v5016_v32 = vpop.eup %3049  ;;  %3069 = vpow2.f32 %v1899_v10  ;;  %v6050_v4 = vsub.f32 %v5998_v62, %v4711_v41  ;;  %v6051_v10 = vsub.f32 %v4697_v0, %v4709_v54 }
 0x529   : > { %v1937_v50 = vadd.f32 %v4980_v48, %v1936_v23  ;;  %v1907_v23 = vmul.f32 1.442695, %v6049_v42  ;;  %v1960_v11 = vadd.f32 %v5011_v17, %v1959_v20  ;;  %v5023_v22 = vpop.eup %3051  ;;  %3071 = vpow2.f32 %v1837_v34 }
 0x52a   : > { %v1845_v12 = vmul.f32 1.442695, %v6050_v4  ;;  %v5028_v28 = vpop.eup %3053  ;;  %3073 = vpow2.f32 %v1903_v51  ;;  %v6052_v34 = vsub.f32 %v6000_v9, %v4711_v41  ;;  %v6053_v51 = vsub.f32 %v4703_v56, %v4709_v54 }
 0x52b   : > { %v1938_v39 = vadd.f32 %v4992_v49, %v1937_v50  ;;  %v1911_v50 = vmul.f32 1.442695, %v6051_v10  ;;  %v1961_v26 = vadd.f32 %v5023_v22, %v1960_v11  ;;  %v5035_v44 = vpop.eup %3055  ;;  %3075 = vpow2.f32 %v1841_v6 }
 0x52c   : > { %v1849_v29 = vmul.f32 1.442695, %v6052_v34  ;;  %v5040_v62 = vpop.eup %3057  ;;  %3077 = vpow2.f32 %v1907_v23  ;;  %v6054_v6 = vsub.f32 %v6001_v35, %v4711_v41  ;;  %v6055_v54 = vsub.f32 %v6002_v2, %v4711_v41 }
 0x52d   : > { %v1939_v8 = vadd.f32 %v5004_v61, %v1938_v39  ;;  %v1915_v39 = vmul.f32 1.442695, %v6053_v51  ;;  %v1962_v20 = vadd.f32 %v5035_v44, %v1961_v26  ;;  %v5047_v37 = vpop.eup %3059  ;;  %3079 = vpow2.f32 %v1845_v12 }
 0x52e   : > { %v1853_v42 = vmul.f32 1.442695, %v6054_v6  ;;  %v5052_v9 = vpop.eup %3061  ;;  %3081 = vpow2.f32 %v1911_v50  ;;  %v1857_v11 = vmul.f32 1.442695, %v6055_v54  ;;  %v6056_v50 = vsub.f32 %v6003_v21, %v4711_v41 }
 0x52f   : > { %v1940_v52 = vadd.f32 %v5016_v32, %v1939_v8  ;;  %v1963_v8 = vadd.f32 %v5047_v37, %v1962_v20  ;;  %v5056_v56 = vpop.eup %3063  ;;  %3083 = vpow2.f32 %v1849_v29  ;;  %v6057_v51 = vsub.f32 %v6004_v43, %v4711_v41 }
 0x530   : > { %v5061_v4 = vpop.eup %3065  ;;  %3085 = vpow2.f32 %v1915_v39 }
 0x531   : > { %v1941_v0 = vadd.f32 %v5028_v28, %v1940_v52  ;;  %v1964_v12 = vadd.f32 %v5056_v56, %v1963_v8  ;;  %v5065_v10 = vpop.eup %3067  ;;  %3087 = vpow2.f32 %v1853_v42  ;;  %v1861_v52 = vmul.f32 1.442695, %v6056_v50 }
 0x532   : > { %v5070_v26 = vpop.eup %3069  ;;  %3089 = vpow2.f32 %v1857_v11  ;;  %v1865_v39 = vmul.f32 1.442695, %v6057_v51  ;;  %v6058_v42 = vsub.f32 %v6006_v31, %v4711_v41  ;;  %v2627_v11 = vld [vmem:[%s3966_s24 + $0x18] sm:$0xff] }
 0x533   : > { %v1942_v23 = vadd.f32 %v5040_v62, %v1941_v0  ;;  %v1965_v34 = vadd.f32 %v5065_v10, %v1964_v12  ;;  %v5074_v29 = vpop.eup %3071  ;;  %3091 = vpow2.f32 %v1861_v52  ;;  %v6060_v12 = vsub.f32 %v6007_v15, %v4711_v41 }
 0x534   : > { %v5079_v0 = vpop.eup %3073  ;;  %3093 = vpow2.f32 %v1865_v39 }
 0x535   : > { %v1943_v35 = vadd.f32 %v5052_v9, %v1942_v23  ;;  %v1966_v21 = vadd.f32 %v5074_v29, %v1965_v34  ;;  %v5083_v6 = vpop.eup %3075  ;;  %v1869_v23 = vmul.f32 1.442695, %v6058_v42  ;;  %v1873_v50 = vmul.f32 1.442695, %v6060_v12 }
 0x536   : > { %v5088_v8 = vpop.eup %3077 }
 0x537   : > { %v1944_v2 = vadd.f32 %v5061_v4, %v1943_v35  ;;  %v1967_v43 = vadd.f32 %v5083_v6, %v1966_v21  ;;  %v5093_v35 = vpop.eup %3079  ;;  %3095 = vpow2.f32 %v1869_v23 }
 0x538   : > { %6059 = vst [vmem:[#allocation29_spill] sm:$0xff] %v5093_v35  ;;  %v5098_v52 = vpop.eup %3081  ;;  %3097 = vpow2.f32 %v1873_v50 }
 0x539   : > { %v1945_v20 = vadd.f32 %v5070_v26, %v1944_v2  ;;  %v1996_v2 = vpack.c.bf16 %v2627_v11, %v2627_v11  ;;  %v1968_v34 = vadd.f32 %v5093_v35, %v1967_v43  ;;  %v5102_v51 = vpop.eup %3083 }
 0x53a   : > { %6061 = vst [vmem:[#allocation30_spill] sm:$0xff] %v5102_v51  ;;  %v5107_v39 = vpop.eup %3085 }
 0x53b   : > { %v1946_v54 = vadd.f32 %v5079_v0, %v1945_v20  ;;  %v6062_v20 = vsub.f32 %v6008_v46, %v4711_v41  ;;  %2125 = vmatprep.mubr.bf16.mxu0 %v1996_v2  ;;  %v1969_v42 = vadd.f32 %v5102_v51, %v1968_v34  ;;  %v5111_v11 = vpop.eup %3087  ;;  %v6065_v2 = vld [vmem:[#allocation15_spill] sm:$0xff] }
 0x53c   : > { %v5118_v46 = vpop.eup %3089 }
 0x53d   : > { %v1947_v31 = vadd.f32 %v5088_v8, %v1946_v54  ;;  %v1877_v21 = vmul.f32 1.442695, %v6062_v20  ;;  %v6063_v54 = vsub.f32 %v6009_v63, %v4711_v41  ;;  %v1970_v12 = vadd.f32 %v5111_v11, %v1969_v42  ;;  %6064 = vst [vmem:[#allocation31_spill] sm:$0xff] %v5118_v46  ;;  %v5124_v51 = vpop.eup %3091 }
 0x53e   : > { %v6066_v20 = vsub.f32 %v6065_v2, %v4711_v41  ;;  %v6067_v63 = vsub.f32 %v6012_v3, %v4711_v41 }
 0x53f   : > { %v1948_v15 = vadd.f32 %v5098_v52, %v1947_v31  ;;  %v1881_v43 = vmul.f32 1.442695, %v6063_v54  ;;  %3099 = vpow2.f32 %v1877_v21  ;;  %v1971_v34 = vadd.f32 %v5118_v46, %v1970_v12  ;;  %v5130_v54 = vpop.eup %3093 }
 0x540   : > { %v1885_v31 = vmul.f32 1.442695, %v6066_v20  ;;  %v1889_v50 = vmul.f32 1.442695, %v6067_v63  ;;  %6068 = vst [vmem:[#allocation9_spill] sm:$0xff] %v5130_v54  ;;  %v6069_v21 = vsub.f32 %v6013_v7, %v4711_v41  ;;  %v6072_v7 = vsub.f32 %v6016_v57, %v4711_v41 }
 0x541   : > { %v1949_v23 = vadd.f32 %v5107_v39, %v1948_v15  ;;  %3101 = vpow2.f32 %v1881_v43  ;;  %v1972_v42 = vadd.f32 %v5124_v51, %v1971_v34  ;;  %v5136_v46 = vpop.eup %3095  ;;  %v6070_v43 = vld [vmem:[#allocation18_spill] sm:$0xff] }
 0x542   : > { %3103 = vpow2.f32 %v1885_v31  ;;  %v1893_v2 = vmul.f32 1.442695, %v6069_v21  ;;  %v6071_v3 = vsub.f32 %v6070_v43, %v4711_v41  ;;  %v5142_v34 = vpop.eup %3097  ;;  %v1901_v31 = vmul.f32 1.442695, %v6072_v7 }
 0x543   : > { %v1950_v35 = vrot.slane %v1949_v23, 4  ;;  %v1973_v12 = vadd.f32 %v5130_v54, %v1972_v42  ;;  %3105 = vpow2.f32 %v1889_v50  ;;  %v6073_v50 = vsub.f32 %v6017_v60, %v4711_v41 }
 0x544   : > { %v1897_v63 = vmul.f32 1.442695, %v6071_v3  ;;  %3107 = vpow2.f32 %v1893_v2 }
 0x545   : > { %v1951_v15 = vadd.f32 %v1950_v35, %v1949_v23  ;;  %v1974_v23 = vadd.f32 %v5136_v46, %v1973_v12  ;;  %v1905_v43 = vmul.f32 1.442695, %v6073_v50 }
 0x546   : > { %3109 = vpow2.f32 %v1897_v63  ;;  %v6075_v63 = vsub.f32 %v6019_v25, %v4711_v41 }
 0x547   : > { %v1952_v20 = vrot.slane %v1951_v15, 2  ;;  %v1975_v42 = vadd.f32 %v5142_v34, %v1974_v23  ;;  %3111 = vpow2.f32 %v1901_v31 }
 0x548   : > { %3113 = vpow2.f32 %v1905_v43  ;;  %v1913_v60 = vmul.f32 1.442695, %v6075_v63 }
 0x549   : > { %v1953_v35 = vadd.f32 %v1952_v20, %v1951_v15  ;;  %v5148_v54 = vpop.eup %3099  ;;  %v6074_v15 = vsub.f32 %v6018_v36, %v4711_v41 }
 0x54a   : > { %v1976_v2 = vadd.f32 %v5148_v54, %v1975_v42  ;;  %v6076_v42 = vld [vmem:[#allocation25_spill] sm:$0xff] }
 0x54b   : > { %v1954_v21 = vrot.slane %v1953_v35, 1  ;;  %v1909_v20 = vmul.f32 1.442695, %v6074_v15  ;;  %v5157_v12 = vpop.eup %3101  ;;  %v6077_v50 = vsub.f32 %v6076_v42, %v4711_v41 }
 0x54c   : > { %v1977_v3 = vadd.f32 %v5157_v12, %v1976_v2  ;;  %v5160_v23 = vpop.eup %3103 }
 0x54d   : > { %v1955_v57 = vadd.f32 %v1954_v21, %v1953_v35  ;;  %3115 = vpow2.f32 %v1909_v20  ;;  %v5166_v36 = vpop.eup %3105  ;;  %v1917_v35 = vmul.f32 1.442695, %v6077_v50 }
 0x54e   : > { %v1978_v7 = vadd.f32 %v5160_v23, %v1977_v3  ;;  %v5172_v21 = vpop.eup %3107 }
 0x54f   : > { %3117 = vrcp.f32 %v1955_v57 }
 0x550   : > { %v1979_v31 = vadd.f32 %v5166_v36, %v1978_v7  ;;  %3119 = vpow2.f32 %v1913_v60  ;;  %v5175_v15 = vpop.eup %3109 }
 0x551   : > { %3121 = vpow2.f32 %v1917_v35  ;;  %v5178_v20 = vpop.eup %3111 }
 0x552   : > { %v1980_v43 = vadd.f32 %v5172_v21, %v1979_v31  ;;  %v5181_v57 = vpop.eup %3113 }
 0x554   : > { %v1981_v25 = vadd.f32 %v5175_v15, %v1980_v43 }
 0x556   : > { %v1982_v2 = vadd.f32 %v5178_v20, %v1981_v25 }
 0x557   : > { %v5183_v41 = vpop.eup %3115 }
 0x558   : > { %v1983_v3 = vadd.f32 %v5181_v57, %v1982_v2 }
 0x559   : > { %v5186_v63 = vpop.eup %3117 }
 0x55a   : > { %v1984_v60 = vadd.f32 %v5183_v41, %v1983_v3  ;;  %v5189_v7 = vpop.eup %3119  ;;  %v5194_v50 = vmul.f32 %v5186_v63, %v4931_v5  ;;  %v5198_v35 = vmul.f32 %v5186_v63, %v4940_v59  ;;  %v5204_v43 = vmul.f32 %v5186_v63, %v4945_v14 }
 0x55b   : > { %6078 = vst [vmem:[#allocation10_spill] sm:$0xff] %v5189_v7  ;;  %v5200_v31 = vpop.eup %3121  ;;  %v5208_v25 = vmul.f32 %v5186_v63, %v4951_v16  ;;  %v5215_v3 = vmul.f32 %v5186_v63, %v4967_v40  ;;  %v5219_v59 = vmul.f32 %v5186_v63, %v4980_v48  ;;  %v5225_v16 = vmul.f32 %v5186_v63, %v4992_v49 }
 0x55c   : > { %v1985_v42 = vadd.f32 %v5189_v7, %v1984_v60  ;;  %6079 = vst [vmem:[#allocation11_spill] sm:$0xff] %v5200_v31  ;;  %v5229_v60 = vmul.f32 %v5186_v63, %v5004_v61  ;;  %v5239_v5 = vmul.f32 %v5186_v63, %v5028_v28  ;;  %v5243_v49 = vmul.f32 %v5186_v63, %v5040_v62  ;;  %v6087_v61 = vld [vmem:[#allocation26_spill] sm:$0xff]  ;;  %v6090_v7 = vld [vmem:[#allocation21_spill] sm:$0xff] }
 0x55d   : > { %v5249_v14 = vmul.f32 %v5186_v63, %v5052_v9  ;;  %v5257_v48 = vmul.f32 %v5186_v63, %v5070_v26  ;;  %v5267_v9 = vmul.f32 %v5186_v63, %v5088_v8  ;;  %v5275_v26 = vmul.f32 %v5186_v63, %v5098_v52  ;;  %v6088_v52 = vld [vmem:[#allocation8_spill] sm:$0xff] }
 0x55e   : > { %v1986_v2 = vadd.f32 %v5200_v31, %v1985_v42  ;;  %v5233_v42 = vmul.f32 %v5186_v63, %v5016_v32  ;;  %6080 = vst [vmem:[#allocation12_spill] sm:$0xff] %v5243_v49  ;;  %v5253_v32 = vmul.f32 %v5186_v63, %v5061_v4  ;;  %v5263_v31 = vmul.f32 %v5186_v63, %v5079_v0  ;;  %v6089_v49 = vld [vmem:[#allocation28_spill] sm:$0xff] }
 0x55f   : > { %6081 = vst [vmem:[#allocation13_spill] sm:$0xff] %v5249_v14  ;;  %6083 = vst [vmem:[#allocation16_spill] sm:$0xff] %v5257_v48  ;;  %v1997_v48 = vmul.f32 %v5186_v63, %v6087_v61  ;;  %v5305_v61 = vmul.f32 %v5186_v63, %v4865_v53 }
 0x560   : > { %v1987_v40 = vrot.slane %v1986_v2, 4  ;;  %6082 = vst [vmem:[#allocation14_spill] sm:$0xff] %v5253_v32  ;;  %6084 = vst [vmem:[#allocation17_spill] sm:$0xff] %v5267_v9  ;;  %v1999_v32 = vmul.f32 %v5186_v63, %v6088_v52  ;;  %v6091_v9 = vld [vmem:[#allocation24_spill] sm:$0xff] }
 0x561   : > { %6085 = vst [vmem:[#allocation19_spill] sm:$0xff] %v5275_v26  ;;  %v5297_v8 = vmul.f32 %v5186_v63, %v6091_v9  ;;  %v5316_v9 = vmul.f32 %v5186_v63, %v4877_v47  ;;  %v5336_v47 = vmul.f32 %v5186_v63, %v4913_v1 }
 0x562   : > { %v1988_v28 = vadd.f32 %v1987_v40, %v1986_v2  ;;  %v5279_v2 = vmul.f32 %v5186_v63, %v5107_v39  ;;  %v5291_v39 = vmul.f32 %v5186_v63, %v6089_v49  ;;  %v2003_v40 = vmul.f32 %v5186_v63, %v6090_v7 }
 0x563   : > { %v2061_v49 = vpack.c.bf16 %v1999_v32, %v1997_v48 }
 0x564   : > { %6086 = vst [vmem:[#allocation20_spill] sm:$0xff] %v5279_v2  ;;  %v1989_v0 = vrot.slane %v1988_v28, 2 }
 0x566   : > { %v1990_v62 = vadd.f32 %v1989_v0, %v1988_v28  ;;  %v5309_v28 = vmul.f32 %v5186_v63, %v4871_v38  ;;  %v5332_v0 = vmul.f32 %v5186_v63, %v4904_v58 }
 0x568   : > { %v1991_v4 = vrot.slane %v1990_v62, 1 }
 0x56a   : > { %v1992_v14 = vadd.f32 %v1991_v4, %v1990_v62  ;;  %v2063_v62 = vpack.c.bf16 %v2003_v40, %v5291_v39  ;;  %v5328_v4 = vmul.f32 %v5186_v63, %v4895_v27 }
 0x56c   : > { %3123 = vrcp.f32 %v1992_v14  ;;  %v5301_v14 = vmul.f32 %v5186_v63, %v4856_v19  ;;  %v5320_v19 = vmul.f32 %v5186_v63, %v4886_v13 }
 0x56e   : > { %v2069_v26 = vpack.c.bf16 %v5320_v19, %v5316_v9 }
 0x576   : > { %v5322_v53 = vpop.eup %3123 }
 0x577   : > { %v1998_v13 = vmul.f32 %v5322_v53, %v4956_v18  ;;  %v2000_v52 = vmul.f32 %v5322_v53, %v4962_v33  ;;  %v2002_v38 = vmul.f32 %v5322_v53, %v4975_v30  ;;  %v2004_v27 = vmul.f32 %v5322_v53, %v4987_v55 }
 0x578   : > { %v2006_v58 = vmul.f32 %v5322_v53, %v4999_v24  ;;  %v2008_v1 = vmul.f32 %v5322_v53, %v5011_v17  ;;  %v5352_v18 = vmul.f32 %v5322_v53, %v5023_v22  ;;  %v5356_v33 = vmul.f32 %v5322_v53, %v5035_v44 }
 0x579   : > { %v2062_v7 = vpack.c.bf16 %v2000_v52, %v1998_v13  ;;  %v2757_v30 = vpack.c.bf16 %v1998_v13, %v1997_v48  ;;  %v2758_v2 = vpack.c.bf16 %v2000_v52, %v1999_v32  ;;  %v5360_v55 = vmul.f32 %v5186_v63, %v4922_v45 }
 0x57a   : > { %v2759_v24 = vpack.c.bf16 %v2002_v38, %v5291_v39  ;;  %v2760_v17 = vpack.c.bf16 %v2004_v27, %v2003_v40  ;;  %v2761_v22 = vpack.c.bf16 %v2006_v58, %v5297_v8  ;;  %v2064_v44 = vpack.c.bf16 %v2004_v27, %v2002_v38 }
 0x57b   : > { %2093 = vmatprep.subr.bf16.mxu0 %v2062_v7  ;;  %2676 = vst [vmem:[%s4246_s29 + $0x100] sm:$0xff] %v2757_v30  ;;  %2677 = vst [vmem:[%s4246_s29 + $0x108] sm:$0xff] %v2758_v2  ;;  %v2762_v48 = vpack.c.bf16 %v2008_v1, %v5301_v14  ;;  %v2763_v45 = vpack.c.bf16 %v5352_v18, %v5305_v61  ;;  %v2764_v63 = vpack.c.bf16 %v5356_v33, %v5309_v28 }
 0x57c   : > { %2094 = vmatpush1.bf16.msra.mxu0 %v2061_v49  ;;  %2678 = vst [vmem:[%s4246_s29 + $0x110] sm:$0xff] %v2759_v24  ;;  %2679 = vst [vmem:[%s4246_s29 + $0x118] sm:$0xff] %v2760_v17  ;;  %v5378_v32 = vmul.f32 %v5322_v53, %v5047_v37  ;;  %v5382_v2 = vmul.f32 %v5322_v53, %v5056_v56  ;;  %v5386_v40 = vmul.f32 %v5322_v53, %v5065_v10  ;;  %v6092_v56 = vld [vmem:[#allocation29_spill] sm:$0xff]  ;;  %v6093_v10 = vld [vmem:[#allocation30_spill] sm:$0xff] }
 0x57d   : > { %2680 = vst [vmem:[%s4246_s29 + $0x120] sm:$0xff] %v2761_v22  ;;  %v5390_v39 = vmul.f32 %v5322_v53, %v5074_v29  ;;  %2095 = vmatprep.subr.bf16.mxu0 %v2064_v44  ;;  %2681 = vst [vmem:[%s4246_s29 + $0x128] sm:$0xff] %v2762_v48  ;;  %v5397_v37 = vmul.f32 %v5322_v53, %v5083_v6  ;;  %v5401_v49 = vmul.f32 %v5322_v53, %v6092_v56  ;;  %v6095_v44 = vld [vmem:[#allocation9_spill] sm:$0xff] }
 0x57e   : > { %2682 = vst [vmem:[%s4246_s29 + $0x130] sm:$0xff] %v2763_v45  ;;  %2683 = vst [vmem:[%s4246_s29 + $0x138] sm:$0xff] %v2764_v63  ;;  %v5405_v7 = vmul.f32 %v5322_v53, %v6093_v10  ;;  %v5409_v29 = vmul.f32 %v5322_v53, %v5111_v11  ;;  %v2066_v38 = vpack.c.bf16 %v2008_v1, %v2006_v58 }
 0x57f   : > { %v2068_v13 = vpack.c.bf16 %v5356_v33, %v5352_v18  ;;  %v2765_v6 = vpack.c.bf16 %v5378_v32, %v5316_v9  ;;  %v2766_v52 = vpack.c.bf16 %v5382_v2, %v5320_v19  ;;  %v2070_v27 = vpack.c.bf16 %v5382_v2, %v5378_v32 }
 0x580   : > { %v2767_v11 = vpack.c.bf16 %v5386_v40, %v5328_v4  ;;  %v2768_v58 = vpack.c.bf16 %v5390_v39, %v5332_v0  ;;  %v2769_v1 = vpack.c.bf16 %v5397_v37, %v5336_v47  ;;  %2096 = vmatpush1.bf16.msra.mxu0 %v2063_v62  ;;  %v2770_v18 = vpack.c.bf16 %v5401_v49, %v5360_v55  ;;  %v6094_v62 = vld [vmem:[#allocation31_spill] sm:$0xff] }
 0x581   : > { %2684 = vst [vmem:[%s4246_s29 + $0x140] sm:$0xff] %v2765_v6  ;;  %2685 = vst [vmem:[%s4246_s29 + $0x148] sm:$0xff] %v2766_v52  ;;  %v2076_v33 = vpack.c.bf16 %v5409_v29, %v5405_v7  ;;  %v2771_v30 = vpack.c.bf16 %v5405_v7, %v5194_v50  ;;  %v2772_v24 = vpack.c.bf16 %v5409_v29, %v5198_v35  ;;  %2097 = vmatprep.subr.bf16.mxu0 %v2066_v38 }
 0x582   : > { %2686 = vst [vmem:[%s4246_s29 + $0x150] sm:$0xff] %v2767_v11  ;;  %2687 = vst [vmem:[%s4246_s29 + $0x158] sm:$0xff] %v2768_v58  ;;  %v5440_v17 = vmul.f32 %v5322_v53, %v6094_v62  ;;  %v5444_v22 = vmul.f32 %v5322_v53, %v5124_v51  ;;  %v5448_v48 = vmul.f32 %v5322_v53, %v6095_v44  ;;  %v6098_v62 = vld [vmem:[#allocation11_spill] sm:$0xff] }
 0x583   : > { %2688 = vst [vmem:[%s4246_s29 + $0x160] sm:$0xff] %v2769_v1  ;;  %v5452_v45 = vmul.f32 %v5322_v53, %v5136_v46  ;;  %2689 = vst [vmem:[%s4246_s29 + $0x168] sm:$0xff] %v2770_v18  ;;  %v5459_v63 = vmul.f32 %v5322_v53, %v5142_v34  ;;  %v5463_v51 = vmul.f32 %v5322_v53, %v5148_v54 }
 0x584   : > { %2690 = vst [vmem:[%s4246_s29 + $0x170] sm:$0xff] %v2771_v30  ;;  %2691 = vst [vmem:[%s4246_s29 + $0x178] sm:$0xff] %v2772_v24  ;;  %v5467_v32 = vmul.f32 %v5322_v53, %v5157_v12  ;;  %v5471_v46 = vmul.f32 %v5322_v53, %v5160_v23  ;;  %v2078_v2 = vpack.c.bf16 %v5444_v22, %v5440_v17  ;;  %v6097_v24 = vld [vmem:[#allocation10_spill] sm:$0xff] }
 0x585   : > { %v2773_v34 = vpack.c.bf16 %v5440_v17, %v5204_v43  ;;  %v2774_v54 = vpack.c.bf16 %v5444_v22, %v5208_v25  ;;  %v2080_v12 = vpack.c.bf16 %v5452_v45, %v5448_v48  ;;  %v6096_v56 = vpack.c.bf16 %v5301_v14, %v5297_v8  ;;  %v6100_v22 = vld [vmem:[#allocation12_spill] sm:$0xff] }
 0x586   : > { %v2775_v23 = vpack.c.bf16 %v5448_v48, %v5215_v3  ;;  %v2776_v10 = vpack.c.bf16 %v5452_v45, %v5219_v59  ;;  %v2082_v38 = vpack.c.bf16 %v5463_v51, %v5459_v63  ;;  %v2777_v6 = vpack.c.bf16 %v5459_v63, %v5225_v16  ;;  %v6101_v48 = vld [vmem:[#allocation13_spill] sm:$0xff] }
 0x587   : > { %2098 = vmatpush1.bf16.msra.mxu0 %v6096_v56  ;;  %2692 = vst [vmem:[%s4246_s29 + $0x180] sm:$0xff] %v2773_v34  ;;  %2693 = vst [vmem:[%s4246_s29 + $0x188] sm:$0xff] %v2774_v54  ;;  %v2778_v8 = vpack.c.bf16 %v5463_v51, %v5229_v60  ;;  %v2084_v14 = vpack.c.bf16 %v5471_v46, %v5467_v32  ;;  %v2779_v52 = vpack.c.bf16 %v5467_v32, %v5233_v42  ;;  %v6103_v51 = vld [vmem:[#allocation16_spill] sm:$0xff]  ;;  %v6105_v54 = vld [vmem:[#allocation19_spill] sm:$0xff] }
 0x588   : > { %2099 = vmatprep.subr.bf16.mxu0 %v2068_v13  ;;  %v2780_v11 = vpack.c.bf16 %v5471_v46, %v5239_v5  ;;  %2694 = vst [vmem:[%s4246_s29 + $0x190] sm:$0xff] %v2775_v23  ;;  %2695 = vst [vmem:[%s4246_s29 + $0x198] sm:$0xff] %v2776_v10  ;;  %v2046_v13 = vmul.f32 %v5322_v53, %v5166_v36  ;;  %v2048_v58 = vmul.f32 %v5322_v53, %v5172_v21  ;;  %v6106_v23 = vld [vmem:[#allocation20_spill] sm:$0xff] }
 0x589   : > { %2696 = vst [vmem:[%s4246_s29 + $0x1a0] sm:$0xff] %v2777_v6  ;;  %v2050_v1 = vmul.f32 %v5322_v53, %v5175_v15  ;;  %v2052_v18 = vmul.f32 %v5322_v53, %v5178_v20  ;;  %2697 = vst [vmem:[%s4246_s29 + $0x1a8] sm:$0xff] %v2778_v8  ;;  %v2054_v30 = vmul.f32 %v5322_v53, %v5181_v57 }
 0x58a   : > { %2698 = vst [vmem:[%s4246_s29 + $0x1b0] sm:$0xff] %v2779_v52  ;;  %2699 = vst [vmem:[%s4246_s29 + $0x1b8] sm:$0xff] %v2780_v11  ;;  %v2056_v36 = vmul.f32 %v5322_v53, %v5183_v41  ;;  %v2058_v21 = vmul.f32 %v5322_v53, %v6097_v24  ;;  %v2060_v15 = vmul.f32 %v5322_v53, %v6098_v62  ;;  %v6102_v41 = vld [vmem:[#allocation14_spill] sm:$0xff] }
 0x58b   : > { %v6099_v20 = vpack.c.bf16 %v5309_v28, %v5305_v61  ;;  %v2086_v17 = vpack.c.bf16 %v2048_v58, %v2046_v13  ;;  %v2781_v44 = vpack.c.bf16 %v2046_v13, %v6100_v22  ;;  %v2782_v57 = vpack.c.bf16 %v2048_v58, %v6101_v48  ;;  %v6104_v28 = vld [vmem:[#allocation17_spill] sm:$0xff] }
 0x58c   : > { %v2088_v45 = vpack.c.bf16 %v2052_v18, %v2050_v1  ;;  %v2783_v63 = vpack.c.bf16 %v2050_v1, %v6102_v41  ;;  %v2784_v53 = vpack.c.bf16 %v2052_v18, %v6103_v51  ;;  %v2090_v32 = vpack.c.bf16 %v2056_v36, %v2054_v30 }
 0x58d   : > { %2100 = vmatpush1.bf16.msra.mxu0 %v6099_v20  ;;  %v2785_v61 = vpack.c.bf16 %v2054_v30, %v5263_v31  ;;  %2700 = vst [vmem:[%s4246_s29 + $0x1c0] sm:$0xff] %v2781_v44  ;;  %2701 = vst [vmem:[%s4246_s29 + $0x1c8] sm:$0xff] %v2782_v57  ;;  %v2786_v46 = vpack.c.bf16 %v2056_v36, %v6104_v28  ;;  %v2092_v34 = vpack.c.bf16 %v2060_v15, %v2058_v21 }
 0x58e   : > { %2101 = vmatprep.subr.bf16.mxu0 %v2070_v27  ;;  %v2787_v56 = vpack.c.bf16 %v2058_v21, %v6105_v54  ;;  %v2788_v10 = vpack.c.bf16 %v2060_v15, %v6106_v23  ;;  %v2072_v27 = vpack.c.bf16 %v5390_v39, %v5386_v40  ;;  %2702 = vst [vmem:[%s4246_s29 + $0x1d0] sm:$0xff] %v2783_v63  ;;  %2703 = vst [vmem:[%s4246_s29 + $0x1d8] sm:$0xff] %v2784_v53 }
 0x58f   : > { %2704 = vst [vmem:[%s4246_s29 + $0x1e0] sm:$0xff] %v2785_v61  ;;  %2705 = vst [vmem:[%s4246_s29 + $0x1e8] sm:$0xff] %v2786_v46  ;;  %v2071_v6 = vpack.c.bf16 %v5332_v0, %v5328_v4  ;;  %v2074_v8 = vpack.c.bf16 %v5401_v49, %v5397_v37  ;;  %v2073_v40 = vpack.c.bf16 %v5360_v55, %v5336_v47  ;;  %v6117_v37 = vld [vmem:[#allocation27_spill] sm:$0xff] }
 0x590   : > { %2706 = vst [vmem:[%s4246_s29 + $0x1f0] sm:$0xff] %v2787_v56  ;;  %2707 = vst [vmem:[%s4246_s29 + $0x1f8] sm:$0xff] %v2788_v10  ;;  %v6108_v9 = vpack.c.bf16 %v5208_v25, %v5204_v43  ;;  %v6109_v19 = vpack.c.bf16 %v5219_v59, %v5215_v3  ;;  %v6110_v4 = vpack.c.bf16 %v5229_v60, %v5225_v16  ;;  %v2626_v25 = vld [vmem:[%s3966_s24 + $0x10] sm:$0xff]  ;;  %v6116_v16 = vmov 0   ;;  %s3239_s24 = smov [#allocation4]  }
 0x591   : > { %2102 = vmatpush1.bf16.msra.mxu0 %v2069_v26  ;;  %v6107_v26 = vpack.c.bf16 %v5198_v35, %v5194_v50  ;;  %v6111_v50 = vpack.c.bf16 %v5239_v5, %v5233_v42  ;;  %v6112_v35 = vpack.c.bf16 %v6101_v48, %v6100_v22  ;;  %v6113_v43 = vpack.c.bf16 %v6103_v51, %v6102_v41  ;;  %s3129_s27 = sshll.u32 %s3239_s24, 4  ;;  %s3130_s27 = int_to_ptr.vmem [resolvable:$false] %s3129_s27 }
 0x592   : > { %2103 = vmatprep.subr.bf16.mxu0 %v2072_v27  ;;  %v6114_v3 = vpack.c.bf16 %v6104_v28, %v5263_v31  ;;  %v1995_v5 = vpack.c.bf16 %v2626_v25, %v2626_v25  ;;  %v6115_v59 = vpack.c.bf16 %v6106_v23, %v6105_v54  ;;  %s3131_s29 = scalar_lea.vmem %s3130_s27, 16384  ;;  %p3132_p1 = scmp.lt.s32.totalorder %s5597_s12, %s3130_s27 }
 0x593   : > { %p3133_p2 = scmp.lt.s32.totalorder %s3131_s29, %s3125_s17 }
 0x595   : > { %2104 = vmatpush1.bf16.msra.mxu0 %v2071_v6  ;;  %p3134_p3 = por %p3133_p2, %p3132_p1 }
 0x596   : > { %2105 = vmatprep.subr.bf16.mxu0 %v2074_v8 }
 0x597   : > { %p3135_p5 = pnand %p3134_p3, %p3128_p0 }
 0x599   : > { %2106 = vmatpush1.bf16.msra.mxu0 %v2073_v40 }
 0x59a   : > { %2107 = vmatprep.subr.bf16.mxu0 %v2076_v33 }
 0x59d   : > { %2108 = vmatpush1.bf16.msra.mxu0 %v6107_v26 }
 0x59e   : > { %2109 = vmatprep.subr.bf16.mxu0 %v2078_v2 }
 0x5a1   : > { %2110 = vmatpush1.bf16.msra.mxu0 %v6108_v9 }
 0x5a2   : > { %2111 = vmatprep.subr.bf16.mxu0 %v2080_v12 }
 0x5a5   : > { %2112 = vmatpush1.bf16.msra.mxu0 %v6109_v19 }
 0x5a6   : > { %2113 = vmatprep.subr.bf16.mxu0 %v2082_v38 }
 0x5a9   : > { %2114 = vmatpush1.bf16.msra.mxu0 %v6110_v4 }
 0x5aa   : > { %2115 = vmatprep.subr.bf16.mxu0 %v2084_v14 }
 0x5ad   : > { %2116 = vmatpush1.bf16.msra.mxu0 %v6111_v50 }
 0x5ae   : > { %2117 = vmatprep.subr.bf16.mxu0 %v2086_v17 }
 0x5b1   : > { %2118 = vmatpush1.bf16.msra.mxu0 %v6112_v35 }
 0x5b2   : > { %2119 = vmatprep.subr.bf16.mxu0 %v2088_v45 }
 0x5b5   : > { %2120 = vmatpush1.bf16.msra.mxu0 %v6113_v43 }
 0x5b6   : > { %2121 = vmatprep.subr.bf16.mxu0 %v2090_v32 }
 0x5b9   : > { %2122 = vmatpush1.bf16.msra.mxu0 %v6114_v3 }
 0x5ba   : > { %2123 = vmatprep.subr.bf16.mxu0 %v2092_v34 }
 0x5bd   : > { %2124 = vmatpush1.bf16.msra.mxu0 %v6115_v59 }
 0x5c0   : > { %2126 = vmatmul.mubr.bf16.vlgmr.msra.gmra.mrb[64].mxu0 %v1995_v5 }
 0x5c1   : > { %2367 = vmatprep.mubr.bf16.mxu0 %v6116_v16 }
 0x693   : > { %v2127_v60 = vpop.f32.mrb[64].mxu0 }
 0x694   : > { %v2327_v42 = vpack.c.bf16 %v2127_v60, %v2127_v60  ;;  %v2129_v0 = vpop.f32.mrb[65].mxu0 }
 0x695   : > { %v2328_v47 = vpack.c.bf16 %v2129_v0, %v2129_v0  ;;  %v2131_v55 = vpop.f32.mrb[66].mxu0 }
 0x696   : > { %v2330_v31 = vsel %vm1306_vm3, %v2327_v42, 0  ;;  %v2132_v39 = vpop.f32.mrb[67].mxu0 }
 0x697   : > { %2708 = vmatprep.subr.msk.bf16.mxu0 %vm1306_vm3, %v2328_v47 }
 0x698   : > { %2336 = vmatpush1.bf16.msra.mxu0 %v2330_v31 }
 0x69b   : > { %2709 = vmatmul.mubr.msk.bf16.vlgmr.msra.gmra.mrb[68].mxu0 %vm1302_vm4, %v6117_v37 }
 0x69c   : > { %3138 = shalt.err (!%p3135_p5)
}
 0x69d   : > { %s3139_s7 = scalar_lea.hbm %s5595_s15, 8192  ;;  %s3143_s11 = scalar_lea.hbm %s5685_s5, 16384 }
 0x69e   : > { %p3140_p6 = scmp.ne.s32.totalorder %s5595_s15, %s3139_s7  ;;  %p3144_p10 = scmp.lt.u32.totalorder %s5595_s15, %s5685_s5 }
 0x69f   : > { %p3145_p11 = scmp.lt.u32.totalorder %s3143_s11, %s3139_s7  ;;  %p3147_p13 = scmp.lt.u32.totalorder %s3139_s7, %s5595_s15 }
 0x6a0   : > { %p3141_p7 = pnand %p3140_p6, %p3315_p4 }
 0x6a1   : > { %p3146_p12 = por %p3145_p11, %p3144_p10 }
 0x6a2   : > { %p3142_p9 = pneg %p3141_p7 }
 0x6a3   : > { %p3148_p0 = por %p3147_p13, %p3146_p12 }
 0x6a5   : > { %p3149_p1 = pnand %p3148_p0, %p3142_p9 }
 0x6a7   : > { %3152 = shalt.err (!%p3149_p1)
}
 0x6a8   : > { %s3240_s17 = smov 128   ;;  %s3241_s24 = smov 8  }
 0x6a9   : > { %2794 = dma.vmem_to_hbm [thread:$0]  (%p3315_p4), %s5597_s12, 8192, %s5595_s15, %s2385_s16, %s3240_s17, %s3240_s17, %s3241_s24  }
 0x6aa   : > { %s2401_s27 = sshll.u32 %s4513_s10, 4  ;;  %s2790_s29 = sshll.u32 %s3227_s21, 9  ;;  %s5625_s27 = int_to_ptr.vmem [resolvable:$true] %s2401_s27 }
 0x6ab   : > { %s5630_s9 = scalar_lea.hbm %s5684_s4, %s2790_s29  ;;  %s2380_s11 = scalar_lea.sflag [#allocation3], %s4178_s25 }
 0x6ac   : > { %s3153_s12 = scalar_lea.vmem %s5625_s27, 512  ;;  %s3242_s21 = smov [#allocation2]  }
 0x6ad   : > { %p3154_p2 = scmp.ne.s32.totalorder %s5625_s27, %s3153_s12  ;;  %s3157_s15 = sshll.u32 %s3242_s21, 4  ;;  %s3158_s15 = int_to_ptr.vmem [resolvable:$false] %s3157_s15 }
 0x6ae   : > { %s3159_s16 = scalar_lea.vmem %s3158_s15, 1024  ;;  %p3160_p6 = scmp.lt.s32.totalorder %s5625_s27, %s3158_s15 }
 0x6af   : > { %p3155_p3 = pnand %p3154_p2, %p3315_p4  ;;  %p3161_p7 = scmp.lt.s32.totalorder %s3159_s16, %s3153_s12 }
 0x6b1   : > { %p3156_p5 = pneg %p3155_p3  ;;  %p3162_p9 = por %p3161_p7, %p3160_p6 }
 0x6b3   : > { %p3163_p10 = pnand %p3162_p9, %p3156_p5 }
 0x76e   : > { %v2369_v49 = vpop.f32.mrb[68].mxu0 }
 0x76f   : > { %2710 = vst [vmem:[%s4513_s10 + $0x10] sm:$0xff] %v2369_v49  ;;  %v2371_v7 = vpop.f32.mrb[69].mxu0 }
 0x770   : > { %2711 = vst [vmem:[%s4513_s10 + $0x18] sm:$0xff] %v2371_v7  ;;  %v2373_v29 = vpop.f32.mrb[70].mxu0 }
 0x771   : > { %v2374_v33 = vpop.f32.mrb[71].mxu0 }
 0x772   : > { %3166 = shalt.err (!%p3163_p10)
}
 0x773   : > { %s3167_s10 = scalar_lea.hbm %s5630_s9, 512  ;;  %s3171_s17 = scalar_lea.hbm %s5684_s4, 1024 }
 0x774   : > { %p3168_p11 = scmp.ne.s32.totalorder %s5630_s9, %s3167_s10  ;;  %p3172_p0 = scmp.lt.u32.totalorder %s5630_s9, %s5684_s4 }
 0x775   : > { %p3173_p1 = scmp.lt.u32.totalorder %s3171_s17, %s3167_s10  ;;  %p3175_p3 = scmp.lt.u32.totalorder %s3167_s10, %s5630_s9 }
 0x776   : > { %p3169_p12 = pnand %p3168_p11, %p3315_p4 }
 0x777   : > { %p3174_p2 = por %p3173_p1, %p3172_p0 }
 0x778   : > { %p3170_p13 = pneg %p3169_p12 }
 0x779   : > { %p3176_p5 = por %p3175_p3, %p3174_p2 }
 0x77b   : > { %p3177_p6 = pnand %p3176_p5, %p3170_p13 }
 0x77d   : > { %3180 = shalt.err (!%p3177_p6)
}
 0x77e   : > { %s3243_s7 = smov 256   ;;  %s3244_s8 = smov 16  }
 0x77f   : > { %2793 = dma.vmem_to_hbm [thread:$0]  (%p3315_p4), %s5625_s27, 512, %s5630_s9, %s2380_s11, %s3243_s7, %s3243_s7, %s3244_s8  }
 0x780 PF: > { %p2804_p7 = scmp.ge.s32.totalorder %s3235_s23, 2  ;;  %s2435_s12 = sand.u32 1, %s3215_s18  }
 0x781   : > { %s2436_s21 = scalar_lea.sflag [#allocation3], %s2435_s12 }
 0x782   : > { %p2798_p9 = pnand %p2804_p7, %p3322_p8 }
 0x784   : > { %3206 = dma.done.wait (!%p2798_p9), %s2436_s21, 512  }
 0x785   : > { %3208 = vsyncadd (!%p2798_p9), %s2436_s21, 4294966784  ;;  %s2445_s15 = scalar_lea.sflag [#allocation5], %s2435_s12 }
 0x786   : > { %3210 = dma.done.wait (!%p2798_p9), %s2445_s15, 8192  }
 0x787   : > { %3212 = vsyncadd (!%p2798_p9), %s2445_s15, 4294959104  ;;  %s22_s23 = sadd.s32 1, %s3235_s23   ;;  %s6118_s18 = smov %s3219_s19 }
 0x788   : > { %p19_p10 = scmp.ge.s32.totalorder %s22_s23, 4   ;;  %s6119_s19 = smov %s3223_s20 }
 0x789   : > { %s6120_s20 = smov %s3328_s6  ;;  %s6121_s21 = smov %s3231_s22 }
 0x78a   : > { %s6122_s22 = smov %s6124_s26  ;;  %21 = sbr.rel (!%p19_p10) target bundleno = 6 (0x6), region = 99 }
 0x791   :  { %2450 = vsyncpa [#allocation3], 1 }
 0x792   :  { %2452 = vsyncpa [#allocation3 + $0x1], 1 }
 0x793   :  { %2453 = vsyncpa [#allocation5], 1 }
 0x794   :  { %2455 = vsyncpa [#allocation5 + $0x1], 1 }

</bundles_post_ra>
